<compile_context>
chip_gen: v5e
topology: v5e:2x2
jax: 0.10.0
libtpu: 0.0.40
codegen_flags: <defaults>
</compile_context>

<pallas_src>
import functools

import jax
import jax.numpy as jnp
from jax.experimental import pallas as pl
from jax.experimental.pallas import tpu as pltpu

_LN_EPS = 1e-6  # matches torch.nn.LayerNorm(eps=1e-06)


# --------------------------- Kernel A: time-parallel precompute ------------------------
def _precompute_kernel(
    x_ref, w_ref, b_ref, f1_ref, f2_ref,
    g1_ref, beta1_ref, g2_ref, beta2_ref,
    gates_ref, ybase_ref,
    *, res_conn: bool,
):
    x = x_ref[...]                                              # (BM, D) f32

    # Shared LayerNorm statistics; only gamma/beta differ between ln1 and ln2.
    mu = jnp.mean(x, axis=-1, keepdims=True)
    var = jnp.mean(jnp.square(x - mu), axis=-1, keepdims=True)
    x_hat = (x - mu) * jax.lax.rsqrt(var + _LN_EPS)
    x1 = (x_hat * g1_ref[...] + beta1_ref[...]).astype(jnp.bfloat16)
    x2 = (x_hat * g2_ref[...] + beta2_ref[...]).astype(jnp.bfloat16)

    # Gate pre-activations from the input side: ln1(x) @ W + b     -> (BM, 4D)
    gates_ref[...] = (
        jnp.dot(x1, w_ref[...], preferred_element_type=jnp.float32) + b_ref[...]
    ).astype(gates_ref.dtype)

    # FFWD branch: ffwd_2(relu(ffwd_1(ln2(x))))  [+ x if res_conn] -> (BM, D)
    hid = jax.nn.relu(
        jnp.dot(x2, f1_ref[...], preferred_element_type=jnp.float32)
    )
    yb = jnp.dot(hid.astype(jnp.bfloat16), f2_ref[...],
                 preferred_element_type=jnp.float32)
    if res_conn:
        yb = yb + x
    ybase_ref[...] = yb.astype(ybase_ref.dtype)


# --------------------------- Kernel B: sequential recurrence ---------------------------
def _recurrence_kernel(
    gates_ref, ybase_ref, c0_ref, h0_ref, up_ref,
    c_out_ref, h_out_ref, y_out_ref,
    c_scr, u_scr,
    *, d_model: int,
):
    d = d_model
    t = pl.program_id(0)

    @pl.when(t == 0)
    def _():
        c_scr[...] = c0_ref[...]
        # u carry = h_prev @ U ; use the fused [U | h_proj] weight and keep the U part.
        hu0 = jnp.dot(h0_ref[...].astype(jnp.bfloat16), up_ref[...],
                      preferred_element_type=jnp.float32)
        u_scr[...] = hu0[:, : 4 * d]

    lin = gates_ref[0] + u_scr[...]                             # (B, 4D) f32

    c_tilde = jnp.tanh(lin[:, 3 * d:])
    gates = jax.nn.sigmoid(lin[:, : 3 * d])
    i_gate = gates[:, :d]
    f_gate = gates[:, d: 2 * d]
    o_gate = gates[:, 2 * d: 3 * d]

    c_next = f_gate * c_scr[...] + i_gate * c_tilde
    h_next = o_gate * jnp.tanh(c_next)

    # One fused matmul: h_next @ [U | h_proj]  -> U part feeds step t+1, h_proj part
    # finishes this step's output.
    hu = jnp.dot(h_next.astype(jnp.bfloat16), up_ref[...],
                 preferred_element_type=jnp.float32)            # (B, 5D) f32
    layer_output = ybase_ref[0] + hu[:, 4 * d:]

    c_scr[...] = c_next
    u_scr[...] = hu[:, : 4 * d]

    c_out_ref[0] = c_next.astype(c_out_ref.dtype)
    h_out_ref[0] = h_next.astype(h_out_ref.dtype)
    y_out_ref[0] = layer_output.astype(y_out_ref.dtype)


# ------------------------------------ wrapper ------------------------------------------
def _pick_block_rows(m, target=512):
    """Largest divisor of m that is <= target and a multiple of 8 (else m itself)."""
    if m <= target:
        return m
    for bm in range(target, 7, -1):
        if m % bm == 0 and bm % 8 == 0:
            return bm
    return m


@functools.partial(jax.jit, static_argnames=("res_conn",))
def lstm_layer_seq_forward(x_seq, c0, h0, params, *, res_conn=False):
    """Runs the LSTMLayer (eval mode) over a whole sequence.

    x_seq: (T, B, D); c0, h0: (B, D).  Returns (c_seq, h_seq, out_seq), each (T, B, D).
    """
    T, B, D = x_seq.shape
    M = T * B

    # Pre-cast / pre-fuse weights (could be done once at model-build time).
    w = params["W"].astype(jnp.bfloat16)                               # (D, 4D)
    f1 = params["ffwd_1"].astype(jnp.bfloat16)                         # (D, 4D)
    f2 = params["ffwd_2"].astype(jnp.bfloat16)                         # (4D, D)
    up = jnp.concatenate([params["U"], params["h_proj"]],
                         axis=1).astype(jnp.bfloat16)                  # (D, 5D)
    b = params["b"].astype(jnp.float32)                                # (1, 4D)

    x_flat = x_seq.reshape(M, D).astype(jnp.float32)

    BM = _pick_block_rows(M)
    n_tiles = M // BM

    def resident(shape):
        return pl.BlockSpec(shape, lambda i, _s=shape: (0,) * len(_s))

    # ---- Kernel A: batched, time-parallel precompute -----------------------------------
    pre_w_bytes = (4 * D * D + 4 * D * D + 4 * D * D) * 2
    pre_blk_bytes = BM * (D + 4 * D + 4 * D + D) * 4
    pre_vmem = max(32 * 1024 * 1024, 2 * pre_w_bytes + 4 * pre_blk_bytes)

    gates_flat, ybase_flat = pl.pallas_call(
        functools.partial(_precompute_kernel, res_conn=res_conn),
        out_shape=(jax.ShapeDtypeStruct((M, 4 * D), jnp.float32),
                   jax.ShapeDtypeStruct((M, D), jnp.float32)),
        grid=(n_tiles,),
        in_specs=[
            pl.BlockSpec((BM, D), lambda i: (i, 0)),   # x rows
            resident((D, 4 * D)),                      # W        (bf16)
            resident((1, 4 * D)),                      # b        (f32)
            resident((D, 4 * D)),                      # ffwd_1   (bf16)
            resident((4 * D, D)),                      # ffwd_2   (bf16)
            resident((1, D)), resident((1, D)),        # ln1 gamma / beta
            resident((1, D)), resident((1, D)),        # ln2 gamma / beta
        ],
        out_specs=(pl.BlockSpec((BM, 4 * D), lambda i: (i, 0)),
                   pl.BlockSpec((BM, D), lambda i: (i, 0))),
        compiler_params=pltpu.CompilerParams(
            dimension_semantics=("parallel",),
            vmem_limit_bytes=pre_vmem,
        ),
    )(x_flat, w, b, f1, f2,
      params["ln1_g"], params["ln1_b"], params["ln2_g"], params["ln2_b"])

    pre_gates = gates_flat.reshape(T, B, 4 * D)
    y_base = ybase_flat.reshape(T, B, D)

    # ---- Kernel B: sequential recurrence ------------------------------------------------
    rec_w_bytes = D * 5 * D * 2
    rec_blk_bytes = B * (4 * D + D + 3 * D) * 4
    rec_vmem = max(32 * 1024 * 1024, 2 * rec_w_bytes + 4 * rec_blk_bytes)

    step4 = pl.BlockSpec((1, B, 4 * D), lambda t: (t, 0, 0))
    step1 = pl.BlockSpec((1, B, D), lambda t: (t, 0, 0))
    out_sds = jax.ShapeDtypeStruct((T, B, D), x_seq.dtype)

    c_seq, h_seq, o_seq = pl.pallas_call(
        functools.partial(_recurrence_kernel, d_model=D),
        out_shape=(out_sds, out_sds, out_sds),
        grid=(T,),
        in_specs=[
            step4,                      # precomputed gate pre-activations
            step1,                      # precomputed ffwd branch (+x if res_conn)
            resident((B, D)),           # c0
            resident((B, D)),           # h0
            resident((D, 5 * D)),       # [U | h_proj]  (bf16)
        ],
        out_specs=(step1, step1, step1),
        scratch_shapes=[
            pltpu.VMEM((B, D), jnp.float32),       # c carry
            pltpu.VMEM((B, 4 * D), jnp.float32),   # u = h_prev @ U carry
        ],
        compiler_params=pltpu.CompilerParams(
            dimension_semantics=("arbitrary",),    # time axis is a true recurrence
            vmem_limit_bytes=rec_vmem,
        ),
    )(pre_gates, y_base, c0, h0, up)

    return c_seq, h_seq, o_seq


def lstm_layer_forward(x, c_prev, h_prev, params, *, res_conn=False):
    """Single-step forward matching the torch module signature (eval mode)."""
    c_seq, h_seq, o_seq = lstm_layer_seq_forward(
        x[None], c_prev, h_prev, params, res_conn=res_conn)
    return c_seq[0], h_seq[0], o_seq[0]


# ----------------------------- pure-JAX reference --------------------------------------
def _bdot(a, w):
    # Mirror the kernel's bf16-input / f32-accumulate MXU path for a tight comparison.
    return jnp.dot(a.astype(jnp.bfloat16), w.astype(jnp.bfloat16),
                   preferred_element_type=jnp.float32)


def _layernorm(x, gamma, beta, eps=_LN_EPS):
    mu = jnp.mean(x, axis=-1, keepdims=True)
    var = jnp.mean(jnp.square(x - mu), axis=-1, keepdims=True)
    return (x - mu) * jax.lax.rsqrt(var + eps) * gamma + beta


def _reference_step(x, c_prev, h_prev, p, res_conn=False):
    """Mirrors the torch module (eval mode: dropout disabled)."""
    d = x.shape[-1]
    x_norm = _layernorm(x, p["ln1_g"], p["ln1_b"])
    lin = _bdot(x_norm, p["W"]) + _bdot(h_prev, p["U"]) + p["b"]
    c_tilde = jnp.tanh(lin[:, 3 * d:])
    g = jax.nn.sigmoid(lin[:, : 3 * d])
    i_g, f_g, o_g = g[:, :d], g[:, d: 2 * d], g[:, 2 * d: 3 * d]
    c_next = f_g * c_prev + i_g * c_tilde
    h_next = o_g * jnp.tanh(c_next)
    x_norm2 = _layernorm(x, p["ln2_g"], p["ln2_b"])
    y_ffwd = _bdot(jax.nn.relu(_bdot(x_norm2, p["ffwd_1"])), p["ffwd_2"])
    out = y_ffwd + _bdot(h_next, p["h_proj"])
    if res_conn:
        out = out + x
    return c_next, h_next, out


def _reference_seq(x_seq, c0, h0, p, res_conn=False):
    def step(carry, x):
        c_prev, h_prev = carry
        c_next, h_next, out = _reference_step(x, c_prev, h_prev, p, res_conn)
        return (c_next, h_next), (c_next, h_next, out)
    _, (c_seq, h_seq, o_seq) = jax.lax.scan(step, (c0, h0), x_seq)
    return c_seq, h_seq, o_seq


if __name__ == "__main__":
    T, B, D = 8, 8, 128  # seq len, batch, d_model (D multiple of 128 -> lane-aligned gates)

    key = jax.random.PRNGKey(0)
    ks = jax.random.split(key, 12)

    def init(k, shape, scale):
        return jax.random.uniform(k, shape, jnp.float32, -1.0, 1.0) * scale

    # Weights stored pre-transposed to (in_features, out_features); master copies in f32.
    params = {
        "W": init(ks[0], (D, 4 * D), 1.0 / jnp.sqrt(D)),
        "U": init(ks[1], (D, 4 * D), 1.0 / jnp.sqrt(D)),
        "b": jnp.zeros((1, 4 * D), jnp.float32),
        "h_proj": init(ks[2], (D, D), 1.0 / jnp.sqrt(D)),
        "ffwd_1": init(ks[3], (D, 4 * D), 1.0 / jnp.sqrt(D)),
        "ffwd_2": init(ks[4], (4 * D, D), 1.0 / jnp.sqrt(4 * D)),
        "ln1_g": jnp.ones((1, D), jnp.float32),
        "ln1_b": jnp.zeros((1, D), jnp.float32),
        "ln2_g": jnp.ones((1, D), jnp.float32),
        "ln2_b": jnp.zeros((1, D), jnp.float32),
    }

    x_seq = jax.random.normal(ks[5], (T, B, D), jnp.float32)
    c0 = jax.random.normal(ks[6], (B, D), jnp.float32)
    h0 = jax.random.normal(ks[7], (B, D), jnp.float32)

    # full-sequence path (time-parallel precompute kernel + sequential recurrence kernel)
    c_seq, h_seq, o_seq = jax.block_until_ready(
        lstm_layer_seq_forward(x_seq, c0, h0, params, res_conn=False)
    )

    c_ref, h_ref, o_ref = _reference_seq(x_seq, c0, h0, params, res_conn=False)
    assert jnp.allclose(c_seq, c_ref, atol=2e-2, rtol=2e-2)
    assert jnp.allclose(h_seq, h_ref, atol=2e-2, rtol=2e-2)
    assert jnp.allclose(o_seq, o_ref, atol=2e-2, rtol=2e-2)

    # single-step wrapper (matches the torch module's forward signature)
    c1, h1, o1 = jax.block_until_ready(
        lstm_layer_forward(x_seq[0], c0, h0, params, res_conn=False)
    )
    assert jnp.allclose(c1, c_ref[0], atol=2e-2, rtol=2e-2)
    assert jnp.allclose(h1, h_ref[0], atol=2e-2, rtol=2e-2)
    assert jnp.allclose(o1, o_ref[0], atol=2e-2, rtol=2e-2)

    print("KERNEL_OK")
</pallas_src>

<mosaic_0001>
module attributes {stable_mosaic.version = 11 : i64} {
  func.func @_precompute_kernel(%arg0: i32, %arg1: memref<64x128xf32, #tpu.memory_space<vmem>>, %arg2: memref<128x512xbf16, #tpu.memory_space<vmem>>, %arg3: memref<1x512xf32, #tpu.memory_space<vmem>>, %arg4: memref<128x512xbf16, #tpu.memory_space<vmem>>, %arg5: memref<512x128xbf16, #tpu.memory_space<vmem>>, %arg6: memref<1x128xf32, #tpu.memory_space<vmem>>, %arg7: memref<1x128xf32, #tpu.memory_space<vmem>>, %arg8: memref<1x128xf32, #tpu.memory_space<vmem>>, %arg9: memref<1x128xf32, #tpu.memory_space<vmem>>, %arg10: memref<64x512xf32, #tpu.memory_space<vmem>>, %arg11: memref<64x128xf32, #tpu.memory_space<vmem>>) attributes {dimension_semantics = [#tpu.dimension_semantics<parallel>], iteration_bounds = array<i64: 1>, scalar_prefetch = 0 : i64, scratch_operands = 0 : i64, tpu.core_type = #tpu.core_type<tc>, window_params = [{transform_indices = @transform_0, window_bounds = array<i64: 64, 128>}, {pipeline_mode = #tpu.pipeline_mode<synchronous>, transform_indices = @transform_1, window_bounds = array<i64: 128, 512>}, {pipeline_mode = #tpu.pipeline_mode<synchronous>, transform_indices = @transform_2, window_bounds = array<i64: 1, 512>}, {pipeline_mode = #tpu.pipeline_mode<synchronous>, transform_indices = @transform_3, window_bounds = array<i64: 128, 512>}, {pipeline_mode = #tpu.pipeline_mode<synchronous>, transform_indices = @transform_4, window_bounds = array<i64: 512, 128>}, {pipeline_mode = #tpu.pipeline_mode<synchronous>, transform_indices = @transform_5, window_bounds = array<i64: 1, 128>}, {pipeline_mode = #tpu.pipeline_mode<synchronous>, transform_indices = @transform_6, window_bounds = array<i64: 1, 128>}, {pipeline_mode = #tpu.pipeline_mode<synchronous>, transform_indices = @transform_7, window_bounds = array<i64: 1, 128>}, {pipeline_mode = #tpu.pipeline_mode<synchronous>, transform_indices = @transform_8, window_bounds = array<i64: 1, 128>}, {transform_indices = @transform_9, window_bounds = array<i64: 64, 512>}, {transform_indices = @transform_10, window_bounds = array<i64: 64, 128>}]} {
    %c0 = arith.constant 0 : index
    %c0_0 = arith.constant 0 : index
    %0 = vector.load %arg1[%c0, %c0_0] : memref<64x128xf32, #tpu.memory_space<vmem>>, vector<64x128xf32>
    %cst = arith.constant dense<0.000000e+00> : vector<64xf32>
    %1 = vector.multi_reduction <add>, %0, %cst [1] : vector<64x128xf32> to vector<64xf32>
    %2 = vector.shape_cast %1 : vector<64xf32> to vector<64x1xf32>
    %cst_1 = arith.constant 1.280000e+02 : f32
    %3 = vector.broadcast %cst_1 : f32 to vector<64x1xf32>
    %4 = arith.divf %2, %3 : vector<64x1xf32>
    %5 = vector.broadcast %4 : vector<64x1xf32> to vector<64x128xf32>
    %6 = arith.subf %0, %5 : vector<64x128xf32>
    %7 = arith.mulf %6, %6 : vector<64x128xf32>
    %cst_2 = arith.constant dense<0.000000e+00> : vector<64xf32>
    %8 = vector.multi_reduction <add>, %7, %cst_2 [1] : vector<64x128xf32> to vector<64xf32>
    %9 = vector.shape_cast %8 : vector<64xf32> to vector<64x1xf32>
    %cst_3 = arith.constant 1.280000e+02 : f32
    %10 = vector.broadcast %cst_3 : f32 to vector<64x1xf32>
    %11 = arith.divf %9, %10 : vector<64x1xf32>
    %12 = vector.broadcast %4 : vector<64x1xf32> to vector<64x128xf32>
    %13 = arith.subf %0, %12 : vector<64x128xf32>
    %cst_4 = arith.constant 9.99999997E-7 : f32
    %14 = vector.broadcast %cst_4 : f32 to vector<64x1xf32>
    %15 = arith.addf %11, %14 : vector<64x1xf32>
    %16 = math.rsqrt %15 : vector<64x1xf32>
    %17 = vector.broadcast %16 : vector<64x1xf32> to vector<64x128xf32>
    %18 = arith.mulf %13, %17 : vector<64x128xf32>
    %c0_5 = arith.constant 0 : index
    %c0_6 = arith.constant 0 : index
    %19 = vector.load %arg6[%c0_5, %c0_6] : memref<1x128xf32, #tpu.memory_space<vmem>>, vector<1x128xf32>
    %20 = vector.broadcast %19 : vector<1x128xf32> to vector<64x128xf32>
    %21 = arith.mulf %18, %20 : vector<64x128xf32>
    %c0_7 = arith.constant 0 : index
    %c0_8 = arith.constant 0 : index
    %22 = vector.load %arg7[%c0_7, %c0_8] : memref<1x128xf32, #tpu.memory_space<vmem>>, vector<1x128xf32>
    %23 = vector.broadcast %22 : vector<1x128xf32> to vector<64x128xf32>
    %24 = arith.addf %21, %23 : vector<64x128xf32>
    %25 = arith.truncf %24 : vector<64x128xf32> to vector<64x128xbf16>
    %c0_9 = arith.constant 0 : index
    %c0_10 = arith.constant 0 : index
    %26 = vector.load %arg8[%c0_9, %c0_10] : memref<1x128xf32, #tpu.memory_space<vmem>>, vector<1x128xf32>
    %27 = vector.broadcast %26 : vector<1x128xf32> to vector<64x128xf32>
    %28 = arith.mulf %18, %27 : vector<64x128xf32>
    %c0_11 = arith.constant 0 : index
    %c0_12 = arith.constant 0 : index
    %29 = vector.load %arg9[%c0_11, %c0_12] : memref<1x128xf32, #tpu.memory_space<vmem>>, vector<1x128xf32>
    %30 = vector.broadcast %29 : vector<1x128xf32> to vector<64x128xf32>
    %31 = arith.addf %28, %30 : vector<64x128xf32>
    %32 = arith.truncf %31 : vector<64x128xf32> to vector<64x128xbf16>
    %c0_13 = arith.constant 0 : index
    %c0_14 = arith.constant 0 : index
    %33 = vector.load %arg2[%c0_13, %c0_14] : memref<128x512xbf16, #tpu.memory_space<vmem>>, vector<128x512xbf16>
    %cst_15 = arith.constant dense<0.000000e+00> : vector<64x512xf32>
    %34 = tpu.matmul %25, %33, %cst_15 {dimension_numbers = #tpu.dot_dimension_numbers<[1], [0], [0], [1], [0, 0, 1, 1], [], []>} : vector<64x128xbf16>, vector<128x512xbf16>, vector<64x512xf32> -> vector<64x512xf32>
    %c0_16 = arith.constant 0 : index
    %c0_17 = arith.constant 0 : index
    %35 = vector.load %arg3[%c0_16, %c0_17] : memref<1x512xf32, #tpu.memory_space<vmem>>, vector<1x512xf32>
    %36 = vector.broadcast %35 : vector<1x512xf32> to vector<64x512xf32>
    %37 = arith.addf %34, %36 : vector<64x512xf32>
    %c0_18 = arith.constant 0 : index
    %c0_19 = arith.constant 0 : index
    %38 = vector.load %arg10[%c0_18, %c0_19] : memref<64x512xf32, #tpu.memory_space<vmem>>, vector<64x512xf32>
    tpu.vector_store %arg10[%c0_18, %c0_19], %37 {strides = array<i32>} : memref<64x512xf32, #tpu.memory_space<vmem>>, vector<64x512xf32>,
    %c0_20 = arith.constant 0 : index
    %c0_21 = arith.constant 0 : index
    %39 = vector.load %arg4[%c0_20, %c0_21] : memref<128x512xbf16, #tpu.memory_space<vmem>>, vector<128x512xbf16>
    %cst_22 = arith.constant dense<0.000000e+00> : vector<64x512xf32>
    %40 = tpu.matmul %32, %39, %cst_22 {dimension_numbers = #tpu.dot_dimension_numbers<[1], [0], [0], [1], [0, 0, 1, 1], [], []>} : vector<64x128xbf16>, vector<128x512xbf16>, vector<64x512xf32> -> vector<64x512xf32>
    %cst_23 = arith.constant 0.000000e+00 : f32
    %41 = vector.broadcast %cst_23 : f32 to vector<64x512xf32>
    %42 = arith.maximumf %40, %41 : vector<64x512xf32>
    %43 = arith.truncf %42 : vector<64x512xf32> to vector<64x512xbf16>
    %c0_24 = arith.constant 0 : index
    %c0_25 = arith.constant 0 : index
    %44 = vector.load %arg5[%c0_24, %c0_25] : memref<512x128xbf16, #tpu.memory_space<vmem>>, vector<512x128xbf16>
    %cst_26 = arith.constant dense<0.000000e+00> : vector<64x128xf32>
    %45 = tpu.matmul %43, %44, %cst_26 {dimension_numbers = #tpu.dot_dimension_numbers<[1], [0], [0], [1], [0, 0, 1, 1], [], []>} : vector<64x512xbf16>, vector<512x128xbf16>, vector<64x128xf32> -> vector<64x128xf32>
    %c0_27 = arith.constant 0 : index
    %c0_28 = arith.constant 0 : index
    %46 = vector.load %arg11[%c0_27, %c0_28] : memref<64x128xf32, #tpu.memory_space<vmem>>, vector<64x128xf32>
    tpu.vector_store %arg11[%c0_27, %c0_28], %45 {strides = array<i32>} : memref<64x128xf32, #tpu.memory_space<vmem>>, vector<64x128xf32>,
    return
  }
  func.func @transform_0(%arg0: i32) -> (i32, i32) {
    %c0_i32 = arith.constant 0 : i32
    %c0_i32_0 = arith.constant 0 : i32
    return %arg0, %c0_i32 : i32, i32
  }
  func.func @transform_1(%arg0: i32) -> (i32, i32) {
    %c0_i32 = arith.constant 0 : i32
    %c0_i32_0 = arith.constant 0 : i32
    %c0_i32_1 = arith.constant 0 : i32
    return %c0_i32, %c0_i32_0 : i32, i32
  }
  func.func @transform_2(%arg0: i32) -> (i32, i32) {
    %c0_i32 = arith.constant 0 : i32
    %c0_i32_0 = arith.constant 0 : i32
    %c0_i32_1 = arith.constant 0 : i32
    return %c0_i32, %c0_i32_0 : i32, i32
  }
  func.func @transform_3(%arg0: i32) -> (i32, i32) {
    %c0_i32 = arith.constant 0 : i32
    %c0_i32_0 = arith.constant 0 : i32
    %c0_i32_1 = arith.constant 0 : i32
    return %c0_i32, %c0_i32_0 : i32, i32
  }
  func.func @transform_4(%arg0: i32) -> (i32, i32) {
    %c0_i32 = arith.constant 0 : i32
    %c0_i32_0 = arith.constant 0 : i32
    %c0_i32_1 = arith.constant 0 : i32
    return %c0_i32, %c0_i32_0 : i32, i32
  }
  func.func @transform_5(%arg0: i32) -> (i32, i32) {
    %c0_i32 = arith.constant 0 : i32
    %c0_i32_0 = arith.constant 0 : i32
    %c0_i32_1 = arith.constant 0 : i32
    return %c0_i32, %c0_i32_0 : i32, i32
  }
  func.func @transform_6(%arg0: i32) -> (i32, i32) {
    %c0_i32 = arith.constant 0 : i32
    %c0_i32_0 = arith.constant 0 : i32
    %c0_i32_1 = arith.constant 0 : i32
    return %c0_i32, %c0_i32_0 : i32, i32
  }
  func.func @transform_7(%arg0: i32) -> (i32, i32) {
    %c0_i32 = arith.constant 0 : i32
    %c0_i32_0 = arith.constant 0 : i32
    %c0_i32_1 = arith.constant 0 : i32
    return %c0_i32, %c0_i32_0 : i32, i32
  }
  func.func @transform_8(%arg0: i32) -> (i32, i32) {
    %c0_i32 = arith.constant 0 : i32
    %c0_i32_0 = arith.constant 0 : i32
    %c0_i32_1 = arith.constant 0 : i32
    return %c0_i32, %c0_i32_0 : i32, i32
  }
  func.func @transform_9(%arg0: i32) -> (i32, i32) {
    %c0_i32 = arith.constant 0 : i32
    %c0_i32_0 = arith.constant 0 : i32
    return %arg0, %c0_i32 : i32, i32
  }
  func.func @transform_10(%arg0: i32) -> (i32, i32) {
    %c0_i32 = arith.constant 0 : i32
    %c0_i32_0 = arith.constant 0 : i32
    return %arg0, %c0_i32 : i32, i32
  }
}

module attributes {stable_mosaic.version = 11 : i64} {
  func.func @_recurrence_kernel(%arg0: i32, %arg1: memref<1x8x512xf32, #tpu.memory_space<vmem>>, %arg2: memref<1x8x128xf32, #tpu.memory_space<vmem>>, %arg3: memref<8x128xf32, #tpu.memory_space<vmem>>, %arg4: memref<8x128xf32, #tpu.memory_space<vmem>>, %arg5: memref<128x640xbf16, #tpu.memory_space<vmem>>, %arg6: memref<1x8x128xf32, #tpu.memory_space<vmem>>, %arg7: memref<1x8x128xf32, #tpu.memory_space<vmem>>, %arg8: memref<1x8x128xf32, #tpu.memory_space<vmem>>, %arg9: memref<8x128xf32, #tpu.memory_space<vmem>>, %arg10: memref<8x512xf32, #tpu.memory_space<vmem>>) attributes {dimension_semantics = [#tpu.dimension_semantics<arbitrary>], iteration_bounds = array<i64: 8>, scalar_prefetch = 0 : i64, scratch_operands = 2 : i64, tpu.core_type = #tpu.core_type<tc>, window_params = [{transform_indices = @transform_0, window_bounds = array<i64: 1, 8, 512>}, {transform_indices = @transform_1, window_bounds = array<i64: 1, 8, 128>}, {pipeline_mode = #tpu.pipeline_mode<synchronous>, transform_indices = @transform_2, window_bounds = array<i64: 8, 128>}, {pipeline_mode = #tpu.pipeline_mode<synchronous>, transform_indices = @transform_3, window_bounds = array<i64: 8, 128>}, {pipeline_mode = #tpu.pipeline_mode<synchronous>, transform_indices = @transform_4, window_bounds = array<i64: 128, 640>}, {transform_indices = @transform_5, window_bounds = array<i64: 1, 8, 128>}, {transform_indices = @transform_6, window_bounds = array<i64: 1, 8, 128>}, {transform_indices = @transform_7, window_bounds = array<i64: 1, 8, 128>}]} {
    %c0_i32 = arith.constant 0 : i32
    %0 = arith.cmpi eq, %arg0, %c0_i32 : i32
    %1 = arith.extui %0 : i1 to i32
    %c0_i32_0 = arith.constant 0 : i32
    %2 = arith.cmpi ne, %1, %c0_i32_0 : i32
    scf.if %2 {
      %c0_26 = arith.constant 0 : index
      %c0_27 = arith.constant 0 : index
      %43 = vector.load %arg3[%c0_26, %c0_27] : memref<8x128xf32, #tpu.memory_space<vmem>>, vector<8x128xf32>
      %c0_28 = arith.constant 0 : index
      %c0_29 = arith.constant 0 : index
      %44 = vector.load %arg9[%c0_28, %c0_29] : memref<8x128xf32, #tpu.memory_space<vmem>>, vector<8x128xf32>
      tpu.vector_store %arg9[%c0_28, %c0_29], %43 {strides = array<i32>} : memref<8x128xf32, #tpu.memory_space<vmem>>, vector<8x128xf32>,
      %c0_30 = arith.constant 0 : index
      %c0_31 = arith.constant 0 : index
      %45 = vector.load %arg4[%c0_30, %c0_31] : memref<8x128xf32, #tpu.memory_space<vmem>>, vector<8x128xf32>
      %46 = arith.truncf %45 : vector<8x128xf32> to vector<8x128xbf16>
      %c0_32 = arith.constant 0 : index
      %c0_33 = arith.constant 0 : index
      %47 = vector.load %arg5[%c0_32, %c0_33] : memref<128x640xbf16, #tpu.memory_space<vmem>>, vector<128x640xbf16>
      %cst_34 = arith.constant dense<0.000000e+00> : vector<8x640xf32>
      %48 = tpu.matmul %46, %47, %cst_34 {dimension_numbers = #tpu.dot_dimension_numbers<[1], [0], [0], [1], [0, 0, 1, 1], [], []>} : vector<8x128xbf16>, vector<128x640xbf16>, vector<8x640xf32> -> vector<8x640xf32>
      %49 = vector.extract_strided_slice %48 {offsets = [0, 0], sizes = [8, 512], strides = [1, 1]} : vector<8x640xf32> to vector<8x512xf32>
      %c0_35 = arith.constant 0 : index
      %c0_36 = arith.constant 0 : index
      %50 = vector.load %arg10[%c0_35, %c0_36] : memref<8x512xf32, #tpu.memory_space<vmem>>, vector<8x512xf32>
      tpu.vector_store %arg10[%c0_35, %c0_36], %49 {strides = array<i32>} : memref<8x512xf32, #tpu.memory_space<vmem>>, vector<8x512xf32>,
    } else {
    }
    %c0 = arith.constant 0 : index
    %c0_1 = arith.constant 0 : index
    %c0_2 = arith.constant 0 : index
    %3 = vector.load %arg1[%c0, %c0_1, %c0_2] : memref<1x8x512xf32, #tpu.memory_space<vmem>>, vector<1x8x512xf32>
    %4 = vector.shape_cast %3 : vector<1x8x512xf32> to vector<8x512xf32>
    %c0_3 = arith.constant 0 : index
    %c0_4 = arith.constant 0 : index
    %5 = vector.load %arg10[%c0_3, %c0_4] : memref<8x512xf32, #tpu.memory_space<vmem>>, vector<8x512xf32>
    %6 = arith.addf %4, %5 : vector<8x512xf32>
    %7 = vector.extract_strided_slice %6 {offsets = [0, 384], sizes = [8, 128], strides = [1, 1]} : vector<8x512xf32> to vector<8x128xf32>
    %8 = math.tanh %7 : vector<8x128xf32>
    %9 = vector.extract_strided_slice %6 {offsets = [0, 0], sizes = [8, 384], strides = [1, 1]} : vector<8x512xf32> to vector<8x384xf32>
    %10 = arith.negf %9 : vector<8x384xf32>
    %11 = math.exp %10 : vector<8x384xf32>
    %cst = arith.constant 1.000000e+00 : f32
    %12 = vector.broadcast %cst : f32 to vector<8x384xf32>
    %13 = arith.addf %12, %11 : vector<8x384xf32>
    %14 = arith.divf %12, %13 : vector<8x384xf32>
    %15 = vector.extract_strided_slice %14 {offsets = [0, 0], sizes = [8, 128], strides = [1, 1]} : vector<8x384xf32> to vector<8x128xf32>
    %16 = vector.extract_strided_slice %14 {offsets = [0, 128], sizes = [8, 128], strides = [1, 1]} : vector<8x384xf32> to vector<8x128xf32>
    %17 = vector.extract_strided_slice %14 {offsets = [0, 256], sizes = [8, 128], strides = [1, 1]} : vector<8x384xf32> to vector<8x128xf32>
    %c0_5 = arith.constant 0 : index
    %c0_6 = arith.constant 0 : index
    %18 = vector.load %arg9[%c0_5, %c0_6] : memref<8x128xf32, #tpu.memory_space<vmem>>, vector<8x128xf32>
    %19 = arith.mulf %16, %18 : vector<8x128xf32>
    %20 = arith.mulf %15, %8 : vector<8x128xf32>
    %21 = arith.addf %19, %20 : vector<8x128xf32>
    %22 = math.tanh %21 : vector<8x128xf32>
    %23 = arith.mulf %17, %22 : vector<8x128xf32>
    %24 = arith.truncf %23 : vector<8x128xf32> to vector<8x128xbf16>
    %c0_7 = arith.constant 0 : index
    %c0_8 = arith.constant 0 : index
    %25 = vector.load %arg5[%c0_7, %c0_8] : memref<128x640xbf16, #tpu.memory_space<vmem>>, vector<128x640xbf16>
    %cst_9 = arith.constant dense<0.000000e+00> : vector<8x640xf32>
    %26 = tpu.matmul %24, %25, %cst_9 {dimension_numbers = #tpu.dot_dimension_numbers<[1], [0], [0], [1], [0, 0, 1, 1], [], []>} : vector<8x128xbf16>, vector<128x640xbf16>, vector<8x640xf32> -> vector<8x640xf32>
    %c0_10 = arith.constant 0 : index
    %c0_11 = arith.constant 0 : index
    %c0_12 = arith.constant 0 : index
    %27 = vector.load %arg2[%c0_10, %c0_11, %c0_12] : memref<1x8x128xf32, #tpu.memory_space<vmem>>, vector<1x8x128xf32>
    %28 = vector.shape_cast %27 : vector<1x8x128xf32> to vector<8x128xf32>
    %29 = vector.extract_strided_slice %26 {offsets = [0, 512], sizes = [8, 128], strides = [1, 1]} : vector<8x640xf32> to vector<8x128xf32>
    %30 = arith.addf %28, %29 : vector<8x128xf32>
    %c0_13 = arith.constant 0 : index
    %c0_14 = arith.constant 0 : index
    %31 = vector.load %arg9[%c0_13, %c0_14] : memref<8x128xf32, #tpu.memory_space<vmem>>, vector<8x128xf32>
    tpu.vector_store %arg9[%c0_13, %c0_14], %21 {strides = array<i32>} : memref<8x128xf32, #tpu.memory_space<vmem>>, vector<8x128xf32>,
    %32 = vector.extract_strided_slice %26 {offsets = [0, 0], sizes = [8, 512], strides = [1, 1]} : vector<8x640xf32> to vector<8x512xf32>
    %c0_15 = arith.constant 0 : index
    %c0_16 = arith.constant 0 : index
    %33 = vector.load %arg10[%c0_15, %c0_16] : memref<8x512xf32, #tpu.memory_space<vmem>>, vector<8x512xf32>
    tpu.vector_store %arg10[%c0_15, %c0_16], %32 {strides = array<i32>} : memref<8x512xf32, #tpu.memory_space<vmem>>, vector<8x512xf32>,
    %c0_17 = arith.constant 0 : index
    %c0_18 = arith.constant 0 : index
    %c0_19 = arith.constant 0 : index
    %34 = vector.load %arg6[%c0_17, %c0_18, %c0_19] : memref<1x8x128xf32, #tpu.memory_space<vmem>>, vector<1x8x128xf32>
    %35 = vector.shape_cast %34 : vector<1x8x128xf32> to vector<8x128xf32>
    %36 = vector.shape_cast %21 : vector<8x128xf32> to vector<1x8x128xf32>
    tpu.vector_store %arg6[%c0_17, %c0_18, %c0_19], %36 {strides = array<i32>} : memref<1x8x128xf32, #tpu.memory_space<vmem>>, vector<1x8x128xf32>,
    %c0_20 = arith.constant 0 : index
    %c0_21 = arith.constant 0 : index
    %c0_22 = arith.constant 0 : index
    %37 = vector.load %arg7[%c0_20, %c0_21, %c0_22] : memref<1x8x128xf32, #tpu.memory_space<vmem>>, vector<1x8x128xf32>
    %38 = vector.shape_cast %37 : vector<1x8x128xf32> to vector<8x128xf32>
    %39 = vector.shape_cast %23 : vector<8x128xf32> to vector<1x8x128xf32>
    tpu.vector_store %arg7[%c0_20, %c0_21, %c0_22], %39 {strides = array<i32>} : memref<1x8x128xf32, #tpu.memory_space<vmem>>, vector<1x8x128xf32>,
    %c0_23 = arith.constant 0 : index
    %c0_24 = arith.constant 0 : index
    %c0_25 = arith.constant 0 : index
    %40 = vector.load %arg8[%c0_23, %c0_24, %c0_25] : memref<1x8x128xf32, #tpu.memory_space<vmem>>, vector<1x8x128xf32>
    %41 = vector.shape_cast %40 : vector<1x8x128xf32> to vector<8x128xf32>
    %42 = vector.shape_cast %30 : vector<8x128xf32> to vector<1x8x128xf32>
    tpu.vector_store %arg8[%c0_23, %c0_24, %c0_25], %42 {strides = array<i32>} : memref<1x8x128xf32, #tpu.memory_space<vmem>>, vector<1x8x128xf32>,
    return
  }
  func.func @transform_0(%arg0: i32) -> (i32, i32, i32) {
    %c0_i32 = arith.constant 0 : i32
    %c0_i32_0 = arith.constant 0 : i32
    %c0_i32_1 = arith.constant 0 : i32
    return %arg0, %c0_i32, %c0_i32_0 : i32, i32, i32
  }
  func.func @transform_1(%arg0: i32) -> (i32, i32, i32) {
    %c0_i32 = arith.constant 0 : i32
    %c0_i32_0 = arith.constant 0 : i32
    %c0_i32_1 = arith.constant 0 : i32
    return %arg0, %c0_i32, %c0_i32_0 : i32, i32, i32
  }
  func.func @transform_2(%arg0: i32) -> (i32, i32) {
    %c0_i32 = arith.constant 0 : i32
    %c0_i32_0 = arith.constant 0 : i32
    %c0_i32_1 = arith.constant 0 : i32
    return %c0_i32, %c0_i32_0 : i32, i32
  }
  func.func @transform_3(%arg0: i32) -> (i32, i32) {
    %c0_i32 = arith.constant 0 : i32
    %c0_i32_0 = arith.constant 0 : i32
    %c0_i32_1 = arith.constant 0 : i32
    return %c0_i32, %c0_i32_0 : i32, i32
  }
  func.func @transform_4(%arg0: i32) -> (i32, i32) {
    %c0_i32 = arith.constant 0 : i32
    %c0_i32_0 = arith.constant 0 : i32
    %c0_i32_1 = arith.constant 0 : i32
    return %c0_i32, %c0_i32_0 : i32, i32
  }
  func.func @transform_5(%arg0: i32) -> (i32, i32, i32) {
    %c0_i32 = arith.constant 0 : i32
    %c0_i32_0 = arith.constant 0 : i32
    %c0_i32_1 = arith.constant 0 : i32
    return %arg0, %c0_i32, %c0_i32_0 : i32, i32, i32
  }
  func.func @transform_6(%arg0: i32) -> (i32, i32, i32) {
    %c0_i32 = arith.constant 0 : i32
    %c0_i32_0 = arith.constant 0 : i32
    %c0_i32_1 = arith.constant 0 : i32
    return %arg0, %c0_i32, %c0_i32_0 : i32, i32, i32
  }
  func.func @transform_7(%arg0: i32) -> (i32, i32, i32) {
    %c0_i32 = arith.constant 0 : i32
    %c0_i32_0 = arith.constant 0 : i32
    %c0_i32_1 = arith.constant 0 : i32
    return %arg0, %c0_i32, %c0_i32_0 : i32, i32, i32
  }
}

</mosaic_0001>

<bundles_post_ra>
// kernel: lstm_layer_seq_forward.3
= control target key start
LH: loop header
LB: loop body
LE: loop exit
PB: predicated region body
PF: predicated region fallthrough
CT: control target
= control target key end

     0   :  { %13 = vsyncpa [#allocation5], 0  ;;  %s2409_s0 = inlined_call_operand.vmem [shape: f32[8,8,512], index: 0, kind: input, shape index: {}]   ;;  %s2410_s1 = inlined_call_operand.vmem [shape: f32[8,8,128], index: 1, kind: input, shape index: {}]   ;;  %s2411_s2 = inlined_call_operand.vmem [shape: f32[8,128], index: 2, kind: input, shape index: {}]   ;;  %s2412_s3 = inlined_call_operand.vmem [shape: f32[8,128], index: 3, kind: input, shape index: {}]   ;;  %s2413_s4 = inlined_call_operand.vmem [shape: bf16[128,640], index: 4, kind: input, shape index: {}]   ;;  %s2414_s5 = inlined_call_operand.hbm [shape: f32[8,8,128], index: 5, kind: output, shape index: {0}]   ;;  %s2415_s6 = inlined_call_operand.hbm [shape: f32[8,8,128], index: 6, kind: output, shape index: {1}]   ;;  %s2416_s7 = inlined_call_operand.hbm [shape: f32[8,8,128], index: 7, kind: output, shape index: {2}]  }
   0x1   :  { %15 = vsyncpa [#allocation5 + $0x1], 0 }
   0x2   :  { %16 = vsyncpa [#allocation7], 0 }
   0x3   :  { %18 = vsyncpa [#allocation7 + $0x1], 0  ;;  %s1776_s24 = smov 0   ;;  %s1778_s25 = smov 0  }
   0x4   :  { %s1780_s26 = smov 0   ;;  %s1782_s27 = smov 0  }
   0x5 LB: > { %2420 = sst [smem:[#allocation11_spill]] %s1730_s26  ;;  %s1797_s28 = sadd.s32 4294967295, %s1734_s27   ;;  %s1734_s27 = sphi %s1782_s27, %s2436_s27   ;;  %s1730_s26 = sphi %s1780_s26, %s2433_s26   ;;  %s1726_s25 = sphi %s1778_s25, %s2435_s25   ;;  %s1722_s24 = sphi %s1776_s24, %s2434_s24  }
   0x6   : > { %s2417_s29 = sadd.s32 4294967294, %s1734_s27   ;;  %s1801_s30 = sadd.s32 1, %s1734_s27  }
   0x7   : > { %s146_s8 = sadd.s32 1, %s1730_s26  ;;  %s143_s9 = ssub.s32 %s1734_s27, %s1801_s30 }
   0x8   : > { %p156_p0 = scmp.ne.s32.totalorder %s1730_s26, %s1726_s25  ;;  %p144_p1 = scmp.eq.s32.totalorder %s143_s9, 0 }
   0x9   : > { %p157_p2 = scmp.eq.s32.totalorder %s1797_s28, 7  ;;  %p162_p3 = scmp.ne.s32.totalorder %s1726_s25, %s1722_s24 }
   0xa   : > { %p163_p4 = scmp.eq.s32.totalorder %s2417_s29, 7  ;;  %p1167_p7 = scmp.ge.s32.totalorder %s1734_s27, 1 }
   0xb   : > { %s1814_s10 = scalar_select %p144_p1, %s1730_s26, %s146_s8  }
   0xc   : > { %p1816_p5 = por %p157_p2, %p156_p0  ;;  %p1820_p6 = por %p163_p4, %p162_p3 }
   0xd   : > { %2421 = sst [smem:[#allocation12_spill]] %s1814_s10  ;;  %p257_p8 = scmp.lt.s32.totalorder %s1734_s27, 9 }
   0xf   : > { %p258_p9 = pnand %p1167_p7, %p257_p8 }
  0x10   : > { %s2418_s13 = sand.u32 (!%p258_p9), 1, %s1726_s25   ;;  %p303_p10 = scmp.lt.s32.totalorder (!%p258_p9), %s1797_s28, 7 }
  0x11   : > { %261 = sbr.rel (%p258_p9) target bundleno = 420 (0x1a4), region = 40  ;;  %s1830_s14 = sshll.u32 (!%p258_p9), %s2418_s13, 3 }
  0x12   : > { %s288_s8 = scalar_lea.vmem (!%p258_p9), [#allocation4], %s1830_s14  ;;  %p1174_p11 = scmp.ne.s32.totalorder (!%p258_p9), %s1797_s28, 0 }
  0x16   : > { %s304_s15 = scalar_select %p303_p10, %s1797_s28, 7 }
  0x17   : > { %315 = sbr.rel (%p1174_p11) target bundleno = 205 (0xcd), region = 44 }
  0x18   : > { %s1474_s16 = sshll.u32 %s304_s15, 5  ;;  %s1173_s17 = sshll.u32 %s304_s15, 3 }
  0x19   : > { %s1836_s20 = scalar_lea.vmem %s2409_s0, %s1474_s16  ;;  %s1841_s23 = scalar_lea.vmem %s2410_s1, %s1173_s17 }
  0x1c   : > { %v316_v0 = vld [vmem:[%s2411_s2] sm:$0xff]  ;;  %v1289_v1 = vld [vmem:[%s2413_s4 + $0x118] sm:$0xf]  ;;  %v1505_v2 = vld [vmem:[%s2413_s4 + $0x128] sm:$0xf0] }
  0x1d   : > { %317 = vst [vmem:[#allocation2] sm:$0xff] %v316_v0  ;;  %v1290_v3 = vor.u32 %v1505_v2, %v1289_v1  ;;  %v1503_v4 = vld [vmem:[%s2413_s4 + $0x11c] sm:$0xf]  ;;  %v1291_v5 = vld [vmem:[%s2413_s4 + $0x12c] sm:$0xf0] }
  0x1e   : > { %v1294_v6 = vor.u32 %v1503_v4, %v1291_v5  ;;  %v1297_v7 = vld [vmem:[%s2413_s4 + $0x120] sm:$0xf]  ;;  %v1506_v8 = vld [vmem:[%s2413_s4 + $0x130] sm:$0xf0]  ;;  %v1504_v9 = vld [vmem:[%s2413_s4 + $0x124] sm:$0xf] }
  0x1f   : > { %512 = vmatpush.bf16.msra.mxu0 %v1290_v3  ;;  %v1298_v10 = vor.u32 %v1506_v8, %v1297_v7  ;;  %v1299_v11 = vld [vmem:[%s2413_s4 + $0x134] sm:$0xf0]  ;;  %v1273_v12 = vld [vmem:[%s2413_s4 + $0xf0] sm:$0xf]  ;;  %v1501_v13 = vld [vmem:[%s2413_s4 + $0x100] sm:$0xf0] }
  0x20   : > { %525 = vmatpush.bf16.msra.mxu1 %v1294_v6  ;;  %v1302_v14 = vor.u32 %v1504_v9, %v1299_v11  ;;  %v1274_v15 = vor.u32 %v1501_v13, %v1273_v12  ;;  %v1499_v16 = vld [vmem:[%s2413_s4 + $0xf4] sm:$0xf]  ;;  %v1275_v17 = vld [vmem:[%s2413_s4 + $0x104] sm:$0xf0]  ;;  %v1281_v18 = vld [vmem:[%s2413_s4 + $0xf8] sm:$0xf] }
  0x21   : > { %538 = vmatpush.bf16.msra.mxu2 %v1298_v10  ;;  %v1278_v19 = vor.u32 %v1499_v16, %v1275_v17  ;;  %v1502_v20 = vld [vmem:[%s2413_s4 + $0x108] sm:$0xf0]  ;;  %v1500_v21 = vld [vmem:[%s2413_s4 + $0xfc] sm:$0xf]  ;;  %v1283_v22 = vld [vmem:[%s2413_s4 + $0x10c] sm:$0xf0] }
  0x22   : > { %551 = vmatpush.bf16.msra.mxu3 %v1302_v14  ;;  %v1282_v23 = vor.u32 %v1502_v20, %v1281_v18  ;;  %v1286_v24 = vor.u32 %v1500_v21, %v1283_v22  ;;  %v1257_v25 = vld [vmem:[%s2413_s4 + $0xc8] sm:$0xf]  ;;  %v1497_v26 = vld [vmem:[%s2413_s4 + $0xd8] sm:$0xf0]  ;;  %v1495_v27 = vld [vmem:[%s2413_s4 + $0xcc] sm:$0xf] }
  0x23   : > { %513 = vmatpush.bf16.msra.mxu0 %v1274_v15  ;;  %v1258_v28 = vor.u32 %v1497_v26, %v1257_v25  ;;  %v1259_v29 = vld [vmem:[%s2413_s4 + $0xdc] sm:$0xf0]  ;;  %v1265_v30 = vld [vmem:[%s2413_s4 + $0xd0] sm:$0xf]  ;;  %v1498_v31 = vld [vmem:[%s2413_s4 + $0xe0] sm:$0xf0] }
  0x24   : > { %526 = vmatpush.bf16.msra.mxu1 %v1278_v19  ;;  %v1262_v32 = vor.u32 %v1495_v27, %v1259_v29  ;;  %v1496_v33 = vld [vmem:[%s2413_s4 + $0xd4] sm:$0xf]  ;;  %v1267_v34 = vld [vmem:[%s2413_s4 + $0xe4] sm:$0xf0]  ;;  %v1241_v35 = vld [vmem:[%s2413_s4 + $0xa0] sm:$0xf]  ;;  %v1266_v36 = vor.u32 %v1498_v31, %v1265_v30 }
  0x25   : > { %539 = vmatpush.bf16.msra.mxu2 %v1282_v23  ;;  %v1493_v37 = vld [vmem:[%s2413_s4 + $0xb0] sm:$0xf0]  ;;  %v1491_v38 = vld [vmem:[%s2413_s4 + $0xa4] sm:$0xf]  ;;  %v1243_v39 = vld [vmem:[%s2413_s4 + $0xb4] sm:$0xf0]  ;;  %v1270_v40 = vor.u32 %v1496_v33, %v1267_v34 }
  0x26   : > { %552 = vmatpush.bf16.msra.mxu3 %v1286_v24  ;;  %v1249_v41 = vld [vmem:[%s2413_s4 + $0xa8] sm:$0xf]  ;;  %v1494_v42 = vld [vmem:[%s2413_s4 + $0xb8] sm:$0xf0]  ;;  %v1242_v43 = vor.u32 %v1493_v37, %v1241_v35  ;;  %v1492_v44 = vld [vmem:[%s2413_s4 + $0xac] sm:$0xf]  ;;  %v1246_v46 = vor.u32 %v1491_v38, %v1243_v39 }
  0x27   : > { %514 = vmatpush.bf16.msra.mxu0 %v1258_v28  ;;  %v1251_v45 = vld [vmem:[%s2413_s4 + $0xbc] sm:$0xf0]  ;;  %v1225_v47 = vld [vmem:[%s2413_s4 + $0x78] sm:$0xf]  ;;  %v1489_v48 = vld [vmem:[%s2413_s4 + $0x88] sm:$0xf0]  ;;  %v1250_v49 = vor.u32 %v1494_v42, %v1249_v41 }
  0x28   : > { %527 = vmatpush.bf16.msra.mxu1 %v1262_v32  ;;  %v1487_v50 = vld [vmem:[%s2413_s4 + $0x7c] sm:$0xf]  ;;  %v1227_v51 = vld [vmem:[%s2413_s4 + $0x8c] sm:$0xf0]  ;;  %v1254_v52 = vor.u32 %v1492_v44, %v1251_v45  ;;  %v1233_v53 = vld [vmem:[%s2413_s4 + $0x80] sm:$0xf]  ;;  %v1226_v55 = vor.u32 %v1489_v48, %v1225_v47 }
  0x29   : > { %540 = vmatpush.bf16.msra.mxu2 %v1266_v36  ;;  %v1490_v54 = vld [vmem:[%s2413_s4 + $0x90] sm:$0xf0]  ;;  %v1488_v56 = vld [vmem:[%s2413_s4 + $0x84] sm:$0xf]  ;;  %v1235_v57 = vld [vmem:[%s2413_s4 + $0x94] sm:$0xf0]  ;;  %v1230_v58 = vor.u32 %v1487_v50, %v1227_v51 }
  0x2a   : > { %553 = vmatpush.bf16.msra.mxu3 %v1270_v40  ;;  %v1209_v59 = vld [vmem:[%s2413_s4 + $0x50] sm:$0xf]  ;;  %v1485_v60 = vld [vmem:[%s2413_s4 + $0x60] sm:$0xf0]  ;;  %v1234_v61 = vor.u32 %v1490_v54, %v1233_v53  ;;  %v1483_v62 = vld [vmem:[%s2413_s4 + $0x54] sm:$0xf]  ;;  %v1238_v0 = vor.u32 %v1488_v56, %v1235_v57 }
  0x2b   : > { %515 = vmatpush.bf16.msra.mxu0 %v1242_v43  ;;  %v1211_v63 = vld [vmem:[%s2413_s4 + $0x64] sm:$0xf0]  ;;  %v1217_v1 = vld [vmem:[%s2413_s4 + $0x58] sm:$0xf]  ;;  %v1486_v2 = vld [vmem:[%s2413_s4 + $0x68] sm:$0xf0]  ;;  %v1210_v3 = vor.u32 %v1485_v60, %v1209_v59 }
  0x2c   : > { %528 = vmatpush.bf16.msra.mxu1 %v1246_v46  ;;  %v1484_v4 = vld [vmem:[%s2413_s4 + $0x5c] sm:$0xf]  ;;  %v1219_v5 = vld [vmem:[%s2413_s4 + $0x6c] sm:$0xf0]  ;;  %v1214_v6 = vor.u32 %v1483_v62, %v1211_v63  ;;  %v1193_v7 = vld [vmem:[%s2413_s4 + $0x28] sm:$0xf]  ;;  %v1218_v9 = vor.u32 %v1486_v2, %v1217_v1 }
  0x2d   : > { %541 = vmatpush.bf16.msra.mxu2 %v1250_v49  ;;  %v1481_v8 = vld [vmem:[%s2413_s4 + $0x38] sm:$0xf0]  ;;  %v1479_v10 = vld [vmem:[%s2413_s4 + $0x2c] sm:$0xf]  ;;  %v1195_v11 = vld [vmem:[%s2413_s4 + $0x3c] sm:$0xf0]  ;;  %v1222_v12 = vor.u32 %v1484_v4, %v1219_v5 }
  0x2e   : > { %554 = vmatpush.bf16.msra.mxu3 %v1254_v52  ;;  %v1201_v13 = vld [vmem:[%s2413_s4 + $0x30] sm:$0xf]  ;;  %v1482_v14 = vld [vmem:[%s2413_s4 + $0x40] sm:$0xf0]  ;;  %v1194_v15 = vor.u32 %v1481_v8, %v1193_v7  ;;  %v1480_v16 = vld [vmem:[%s2413_s4 + $0x34] sm:$0xf]  ;;  %v1198_v18 = vor.u32 %v1479_v10, %v1195_v11 }
  0x2f   : > { %516 = vmatpush.bf16.msra.mxu0 %v1226_v55  ;;  %v1203_v17 = vld [vmem:[%s2413_s4 + $0x44] sm:$0xf0]  ;;  %v1177_v19 = vld [vmem:[%s2413_s4] sm:$0xf]  ;;  %v1477_v20 = vld [vmem:[%s2413_s4 + $0x10] sm:$0xf0]  ;;  %v1202_v21 = vor.u32 %v1482_v14, %v1201_v13 }
  0x30   : > { %529 = vmatpush.bf16.msra.mxu1 %v1230_v58  ;;  %v1475_v22 = vld [vmem:[%s2413_s4 + $0x4] sm:$0xf]  ;;  %v1179_v23 = vld [vmem:[%s2413_s4 + $0x14] sm:$0xf0]  ;;  %v1206_v24 = vor.u32 %v1480_v16, %v1203_v17  ;;  %v1185_v25 = vld [vmem:[%s2413_s4 + $0x8] sm:$0xf]  ;;  %v1178_v27 = vor.u32 %v1477_v20, %v1177_v19 }
  0x31   : > { %542 = vmatpush.bf16.msra.mxu2 %v1234_v61  ;;  %v1478_v26 = vld [vmem:[%s2413_s4 + $0x18] sm:$0xf0]  ;;  %v1476_v28 = vld [vmem:[%s2413_s4 + $0xc] sm:$0xf]  ;;  %v1187_v29 = vld [vmem:[%s2413_s4 + $0x1c] sm:$0xf0]  ;;  %v1182_v31 = vor.u32 %v1475_v22, %v1179_v23 }
  0x32   : > { %555 = vmatpush.bf16.msra.mxu3 %v1238_v0  ;;  %v318_v30 = vld [vmem:[%s2412_s3] sm:$0xff]  ;;  %v1186_v32 = vor.u32 %v1478_v26, %v1185_v25  ;;  %v1190_v33 = vor.u32 %v1476_v28, %v1187_v29 }
  0x33   : > { %517 = vmatpush.bf16.msra.mxu0 %v1210_v3  ;;  %v319_v34 = vpack.c.bf16 %v318_v30, %v318_v30 }
  0x34   : > { %530 = vmatpush.bf16.msra.mxu1 %v1214_v6 }
  0x35   : > { %543 = vmatpush.bf16.msra.mxu2 %v1218_v9 }
  0x36   : > { %556 = vmatpush.bf16.msra.mxu3 %v1222_v12 }
  0x37   : > { %518 = vmatpush.bf16.msra.mxu0 %v1194_v15 }
  0x38   : > { %531 = vmatpush.bf16.msra.mxu1 %v1198_v18 }
  0x39   : > { %544 = vmatpush.bf16.msra.mxu2 %v1202_v21 }
  0x3a   : > { %557 = vmatpush.bf16.msra.mxu3 %v1206_v24 }
  0x3b   : > { %519 = vmatpush.bf16.msra.mxu0 %v1178_v27 }
  0x3c   : > { %532 = vmatpush.bf16.msra.mxu1 %v1182_v31 }
  0x3d   : > { %545 = vmatpush.bf16.msra.mxu2 %v1186_v32 }
  0x3e   : > { %558 = vmatpush.bf16.msra.mxu3 %v1190_v33  ;;  %520 = vmatmul.bf16.vlgmr.msra.gmra.mxu0 %v319_v34 }
  0x3f   : > { %533 = vmatmul.bf16.vlgmr.msra.gmra.mxu1 %v319_v34 }
  0x40   : > { %546 = vmatmul.bf16.vlgmr.msra.gmra.mxu2 %v319_v34 }
  0x41   : > { %559 = vmatmul.bf16.vlgmr.msra.gmra.mxu3 %v319_v34 }
  0xbb   : > { %v521_v35 = vpop.f32.mrf.mxu0 }
  0xbc   : > { %564 = vst [vmem:[#allocation3 + $0x10] sm:$0xff] %v521_v35  ;;  %v534_v36 = vpop.f32.mrf.mxu1 }
  0xbd   : > { %565 = vst [vmem:[#allocation3] sm:$0xff] %v534_v36 }
  0xc3   : > { %v547_v37 = vpop.f32.mrf.mxu2  ;;  %v523_v38 = vpop.f32.mrf.mxu0 }
  0xc4   : > { %566 = vst [vmem:[#allocation3 + $0x18] sm:$0xff] %v547_v37  ;;  %v560_v39 = vpop.f32.mrf.mxu3  ;;  %v536_v40 = vpop.f32.mrf.mxu1 }
  0xc5   : > { %567 = vst [vmem:[#allocation3 + $0x8] sm:$0xff] %v560_v39 }
  0xcb   : > { %v549_v41 = vpop.f32.mrf.mxu2 }
  0xcc   : > { %v562_v42 = vpop.f32.mrf.mxu3 }
  0xcd PF: > { %v1448_v43 = vld [vmem:[%s2413_s4 + $0x118] sm:$0xf]  ;;  %v1544_v44 = vld [vmem:[%s2413_s4 + $0x128] sm:$0xf0]  ;;  %v1428_v45 = vld [vmem:[%s2413_s4 + $0xf0] sm:$0xf] }
  0xce   : > { %v1449_v46 = vor.u32 %v1544_v44, %v1448_v43  ;;  %v1539_v47 = vld [vmem:[%s2413_s4 + $0x100] sm:$0xf0]  ;;  %v1456_v48 = vld [vmem:[%s2413_s4 + $0x120] sm:$0xf]  ;;  %v1545_v50 = vld [vmem:[%s2413_s4 + $0x130] sm:$0xf0] }
  0xcf   : > { %v1429_v49 = vor.u32 %v1539_v47, %v1428_v45  ;;  %v1543_v51 = vld [vmem:[%s2413_s4 + $0x124] sm:$0xf]  ;;  %v1458_v52 = vld [vmem:[%s2413_s4 + $0x134] sm:$0xf0]  ;;  %v1408_v53 = vld [vmem:[%s2413_s4 + $0xc8] sm:$0xf]  ;;  %v1457_v55 = vor.u32 %v1545_v50, %v1456_v48 }
  0xd0   : > { %901 = vmatpush.bf16.msra.mxu0 %v1449_v46  ;;  %v1534_v54 = vld [vmem:[%s2413_s4 + $0xd8] sm:$0xf0]  ;;  %v1461_v56 = vor.u32 %v1543_v51, %v1458_v52  ;;  %v1436_v57 = vld [vmem:[%s2413_s4 + $0xf8] sm:$0xf]  ;;  %v1540_v58 = vld [vmem:[%s2413_s4 + $0x108] sm:$0xf0] }
  0xd1   : > { %v1538_v59 = vld [vmem:[%s2413_s4 + $0xfc] sm:$0xf]  ;;  %v1438_v60 = vld [vmem:[%s2413_s4 + $0x10c] sm:$0xf0]  ;;  %v1388_v61 = vld [vmem:[%s2413_s4 + $0xa0] sm:$0xf]  ;;  %927 = vmatpush.bf16.msra.mxu2 %v1457_v55  ;;  %v1437_v62 = vor.u32 %v1540_v58, %v1436_v57  ;;  %v1409_v1 = vor.u32 %v1534_v54, %v1408_v53 }
  0xd2   : > { %940 = vmatpush.bf16.msra.mxu3 %v1461_v56  ;;  %v1441_v63 = vor.u32 %v1538_v59, %v1438_v60  ;;  %v1542_v0 = vld [vmem:[%s2413_s4 + $0x11c] sm:$0xf]  ;;  %v1450_v2 = vld [vmem:[%s2413_s4 + $0x12c] sm:$0xf0]  ;;  %v1535_v4 = vld [vmem:[%s2413_s4 + $0xe0] sm:$0xf0] }
  0xd3   : > { %v1416_v3 = vld [vmem:[%s2413_s4 + $0xd0] sm:$0xf]  ;;  %v1529_v5 = vld [vmem:[%s2413_s4 + $0xb0] sm:$0xf0]  ;;  %v1453_v6 = vor.u32 %v1542_v0, %v1450_v2  ;;  %v1418_v8 = vld [vmem:[%s2413_s4 + $0xe4] sm:$0xf0] }
  0xd4   : > { %902 = vmatpush.bf16.msra.mxu0 %v1429_v49  ;;  %v1533_v7 = vld [vmem:[%s2413_s4 + $0xd4] sm:$0xf]  ;;  %v1430_v10 = vld [vmem:[%s2413_s4 + $0x104] sm:$0xf0]  ;;  %v1368_v11 = vld [vmem:[%s2413_s4 + $0x78] sm:$0xf]  ;;  %v1417_v12 = vor.u32 %v1535_v4, %v1416_v3  ;;  %v1389_v15 = vor.u32 %v1529_v5, %v1388_v61 }
  0xd5   : > { %v1537_v9 = vld [vmem:[%s2413_s4 + $0xf4] sm:$0xf]  ;;  %928 = vmatpush.bf16.msra.mxu2 %v1437_v62  ;;  %v1421_v13 = vor.u32 %v1533_v7, %v1418_v8  ;;  %v1396_v14 = vld [vmem:[%s2413_s4 + $0xa8] sm:$0xf]  ;;  %914 = vmatpush.bf16.msra.mxu1 %v1453_v6  ;;  %v1530_v17 = vld [vmem:[%s2413_s4 + $0xb8] sm:$0xf0] }
  0xd6   : > { %941 = vmatpush.bf16.msra.mxu3 %v1441_v63  ;;  %v1433_v16 = vor.u32 %v1537_v9, %v1430_v10  ;;  %v1528_v18 = vld [vmem:[%s2413_s4 + $0xac] sm:$0xf]  ;;  %v1398_v19 = vld [vmem:[%s2413_s4 + $0xbc] sm:$0xf0]  ;;  %v1348_v23 = vld [vmem:[%s2413_s4 + $0x50] sm:$0xf]  ;;  %v1397_v24 = vor.u32 %v1530_v17, %v1396_v14 }
  0xd7   : > { %v1524_v20 = vld [vmem:[%s2413_s4 + $0x88] sm:$0xf0]  ;;  %v1410_v22 = vld [vmem:[%s2413_s4 + $0xdc] sm:$0xf0]  ;;  %v1401_v25 = vor.u32 %v1528_v18, %v1398_v19  ;;  %v1525_v29 = vld [vmem:[%s2413_s4 + $0x90] sm:$0xf0] }
  0xd8   : > { %903 = vmatpush.bf16.msra.mxu0 %v1409_v1  ;;  %v1532_v21 = vld [vmem:[%s2413_s4 + $0xcc] sm:$0xf]  ;;  %v1376_v26 = vld [vmem:[%s2413_s4 + $0x80] sm:$0xf]  ;;  %v1369_v27 = vor.u32 %v1524_v20, %v1368_v11  ;;  %v1523_v30 = vld [vmem:[%s2413_s4 + $0x84] sm:$0xf] }
  0xd9   : > { %929 = vmatpush.bf16.msra.mxu2 %v1417_v12  ;;  %915 = vmatpush.bf16.msra.mxu1 %v1433_v16  ;;  %v1413_v28 = vor.u32 %v1532_v21, %v1410_v22  ;;  %v1378_v31 = vld [vmem:[%s2413_s4 + $0x94] sm:$0xf0]  ;;  %v1519_v32 = vld [vmem:[%s2413_s4 + $0x60] sm:$0xf0]  ;;  %v1328_v35 = vld [vmem:[%s2413_s4 + $0x28] sm:$0xf]  ;;  %v1377_v36 = vor.u32 %v1525_v29, %v1376_v26 }
  0xda   : > { %942 = vmatpush.bf16.msra.mxu3 %v1421_v13  ;;  %v1527_v33 = vld [vmem:[%s2413_s4 + $0xa4] sm:$0xf]  ;;  %v1390_v34 = vld [vmem:[%s2413_s4 + $0xb4] sm:$0xf0]  ;;  %v1381_v37 = vor.u32 %v1523_v30, %v1378_v31  ;;  %v1349_v39 = vor.u32 %v1519_v32, %v1348_v23  ;;  %v1520_v41 = vld [vmem:[%s2413_s4 + $0x68] sm:$0xf0] }
  0xdb   : > { %v1356_v38 = vld [vmem:[%s2413_s4 + $0x58] sm:$0xf]  ;;  %v1393_v40 = vor.u32 %v1527_v33, %v1390_v34  ;;  %v1518_v42 = vld [vmem:[%s2413_s4 + $0x5c] sm:$0xf]  ;;  %v1358_v43 = vld [vmem:[%s2413_s4 + $0x6c] sm:$0xf0] }
  0xdc   : > { %904 = vmatpush.bf16.msra.mxu0 %v1389_v15  ;;  %v1514_v44 = vld [vmem:[%s2413_s4 + $0x38] sm:$0xf0]  ;;  %v1370_v46 = vld [vmem:[%s2413_s4 + $0x8c] sm:$0xf0]  ;;  %v1515_v48 = vld [vmem:[%s2413_s4 + $0x40] sm:$0xf0]  ;;  %v1357_v52 = vor.u32 %v1520_v41, %v1356_v38  ;;  %v1361_v53 = vor.u32 %v1518_v42, %v1358_v43 }
  0xdd   : > { %930 = vmatpush.bf16.msra.mxu2 %v1397_v24  ;;  %916 = vmatpush.bf16.msra.mxu1 %v1413_v28  ;;  %v1522_v45 = vld [vmem:[%s2413_s4 + $0x7c] sm:$0xf]  ;;  %v1336_v47 = vld [vmem:[%s2413_s4 + $0x30] sm:$0xf]  ;;  %v568_v49 = vld [vmem:[%s1836_s20] sm:$0xff]  ;;  %v1329_v57 = vor.u32 %v1514_v44, %v1328_v35  ;;  %s2426_s13 = scalar_lea.vmem [#allocation6], %s1830_s14 }
  0xde   : > { %943 = vmatpush.bf16.msra.mxu3 %v1401_v25  ;;  %v569_v50 = vld [vmem:[%s1836_s20 + $0x8] sm:$0xff]  ;;  %v1308_v51 = vld [vmem:[%s2413_s4] sm:$0xf]  ;;  %v1513_v54 = vld [vmem:[%s2413_s4 + $0x34] sm:$0xf]  ;;  %v1373_v58 = vor.u32 %v1522_v45, %v1370_v46  ;;  %v1337_v7 = vor.u32 %v1515_v48, %v1336_v47  ;;  %s981_s26 = sand.u32 1, %s1797_s28   ;;  %s2427_s18 = smov %s2426_s13 }
  0xdf   : > { %v570_v55 = vld [vmem:[%s1836_s20 + $0x10] sm:$0xff]  ;;  %v572_v56 = vld [vmem:[#allocation3 + $0x10] sm:$0xff]  ;;  %v1338_v59 = vld [vmem:[%s2413_s4 + $0x44] sm:$0xf0]  ;;  %s2331_s29 = sshll.u32 %s1797_s28, 3  ;;  %s1013_s17 = sshll.u32 %s2427_s18, 4  ;;  %s1014_s17 = int_to_ptr.vmem [resolvable:$true] %s1013_s17 }
  0xe0   : > { %905 = vmatpush.bf16.msra.mxu0 %v1369_v27  ;;  %v573_v60 = vld [vmem:[#allocation3] sm:$0xff]  ;;  %v574_v61 = vld [vmem:[#allocation3 + $0x18] sm:$0xff]  ;;  %v576_v62 = vadd.f32 %v572_v56, %v568_v49  ;;  %v1509_v63 = vld [vmem:[%s2413_s4 + $0x10] sm:$0xf0]  ;;  %v1341_v8 = vor.u32 %v1513_v54, %v1338_v59  ;;  %s1011_s16 = scalar_lea.hbm %s2415_s6, %s2331_s29  ;;  %s2339_s9 = scalar_lea.sflag [#allocation7], %s981_s26 }
  0xe1   : > { %931 = vmatpush.bf16.msra.mxu2 %v1377_v36  ;;  %917 = vmatpush.bf16.msra.mxu1 %v1393_v40  ;;  %v1517_v0 = vld [vmem:[%s2413_s4 + $0x54] sm:$0xf]  ;;  %v1350_v1 = vld [vmem:[%s2413_s4 + $0x64] sm:$0xf0]  ;;  %v577_v2 = vadd.f32 %v573_v60, %v569_v50  ;;  %v578_v3 = vadd.f32 %v574_v61, %v570_v55  ;;  %v1546_v5 = vld [vmem:[%s2413_s4 + $0x138] sm:$0xf0]  ;;  %v1309_v11 = vor.u32 %v1509_v63, %v1308_v51 }
  0xe2   : > { %944 = vmatpush.bf16.msra.mxu3 %v1381_v37  ;;  %v1464_v4 = vld [vmem:[%s2413_s4 + $0x128] sm:$0xf]  ;;  %v1303_v6 = vmul.f32 -1.442695, %v576_v62  ;;  %v1353_v12 = vor.u32 %v1517_v0, %v1350_v1  ;;  %v1444_v14 = vld [vmem:[%s2413_s4 + $0x100] sm:$0xf] }
  0xe3   : > { %v1304_v9 = vmul.f32 -1.442695, %v577_v2  ;;  %v1305_v10 = vmul.f32 -1.442695, %v578_v3  ;;  %v1465_v13 = vor.u32 %v1546_v5, %v1464_v4  ;;  %v1541_v15 = vld [vmem:[%s2413_s4 + $0x110] sm:$0xf0] }
  0xe4   : > { %906 = vmatpush.bf16.msra.mxu0 %v1349_v39  ;;  %1596 = vpow2.f32 %v1303_v6  ;;  %v1445_v16 = vor.u32 %v1541_v15, %v1444_v14  ;;  %v1424_v18 = vld [vmem:[%s2413_s4 + $0xd8] sm:$0xf]  ;;  %v1536_v19 = vld [vmem:[%s2413_s4 + $0xe8] sm:$0xf0]  ;;  %v1316_v22 = vld [vmem:[%s2413_s4 + $0x8] sm:$0xf] }
  0xe5   : > { %932 = vmatpush.bf16.msra.mxu2 %v1357_v52  ;;  %918 = vmatpush.bf16.msra.mxu1 %v1373_v58  ;;  %1598 = vpow2.f32 %v1304_v9  ;;  %v1510_v23 = vld [vmem:[%s2413_s4 + $0x18] sm:$0xf0]  ;;  %v1404_v25 = vld [vmem:[%s2413_s4 + $0xb0] sm:$0xf]  ;;  %v1531_v26 = vld [vmem:[%s2413_s4 + $0xc0] sm:$0xf0]  ;;  %v1425_v29 = vor.u32 %v1536_v19, %v1424_v18 }
  0xe6   : > { %945 = vmatpush.bf16.msra.mxu3 %v1361_v53  ;;  %1600 = vpow2.f32 %v1305_v10  ;;  %v1317_v28 = vor.u32 %v1510_v23, %v1316_v22  ;;  %v571_v30 = vld [vmem:[%s1836_s20 + $0x18] sm:$0xff]  ;;  %v575_v31 = vld [vmem:[#allocation3 + $0x8] sm:$0xff]  ;;  %v1508_v33 = vld [vmem:[%s2413_s4 + $0xc] sm:$0xf]  ;;  %v1405_v38 = vor.u32 %v1531_v26, %v1404_v25  ;;  %s1015_s19 = sshll.u32 %s1011_s16, 4  ;;  %s1016_s19 = int_to_ptr.hbm [resolvable:$true] %s1015_s19 }
  0xe7   : > { %v1318_v34 = vld [vmem:[%s2413_s4 + $0x1c] sm:$0xf0]  ;;  %v1512_v35 = vld [vmem:[%s2413_s4 + $0x2c] sm:$0xf]  ;;  %v579_v37 = vadd.f32 %v575_v31, %v571_v30  ;;  %v1507_v41 = vld [vmem:[%s2413_s4 + $0x4] sm:$0xf] }
  0xe8   : > { %907 = vmatpush.bf16.msra.mxu0 %v1329_v57  ;;  %v1330_v36 = vld [vmem:[%s2413_s4 + $0x3c] sm:$0xf0]  ;;  %v1321_v39 = vor.u32 %v1508_v33, %v1318_v34  ;;  %v1310_v42 = vld [vmem:[%s2413_s4 + $0x14] sm:$0xf0]  ;;  %v1384_v43 = vld [vmem:[%s2413_s4 + $0x88] sm:$0xf] }
  0xe9   : > { %933 = vmatpush.bf16.msra.mxu2 %v1337_v7  ;;  %919 = vmatpush.bf16.msra.mxu1 %v1353_v12  ;;  %v1333_v40 = vor.u32 %v1512_v35, %v1330_v36  ;;  %v1526_v44 = vld [vmem:[%s2413_s4 + $0x98] sm:$0xf0]  ;;  %v1313_v46 = vor.u32 %v1507_v41, %v1310_v42  ;;  %v1364_v57 = vld [vmem:[%s2413_s4 + $0x60] sm:$0xf]  ;;  %v1521_v58 = vld [vmem:[%s2413_s4 + $0x70] sm:$0xf0] }
  0xea   : > { %946 = vmatpush.bf16.msra.mxu3 %v1341_v8  ;;  %v1597_v17 = vpop.eup %1596  ;;  %v1385_v53 = vor.u32 %v1526_v44, %v1384_v43  ;;  %v1365_v2 = vor.u32 %v1521_v58, %v1364_v57  ;;  %v1344_v6 = vld [vmem:[%s2413_s4 + $0x38] sm:$0xf]  ;;  %v1516_v7 = vld [vmem:[%s2413_s4 + $0x48] sm:$0xf0]  ;;  %v1511_v18 = vld [vmem:[%s2413_s4 + $0x20] sm:$0xf0] }
  0xeb   : > { %v1599_v20 = vpop.eup %1598  ;;  %v2234_v21 = vadd.f32 1.0, %v1597_v17  ;;  %v1345_v14 = vor.u32 %v1516_v7, %v1344_v6  ;;  %v1324_v17 = vld [vmem:[%s2413_s4 + $0x10] sm:$0xf]  ;;  %s1626_s21 = sshra.s32 %s1016_s19, 4  ;;  %s1627_s21 = int_to_ptr.hbm [resolvable:$true] %s1626_s21 }
  0xec   : > { %908 = vmatpush.bf16.msra.mxu0 %v1309_v11  ;;  %v1601_v24 = vpop.eup %1600  ;;  %v2248_v27 = vadd.f32 1.0, %v1599_v20  ;;  %v638_v11 = vld [vmem:[#allocation2] sm:$0xff]  ;;  %s1628_s22 = scalar_lea.hbm %s1627_s21, 8  ;;  %p1633_p1 = scmp.lt.s32.totalorder %s1627_s21, %s2415_s6 }
  0xed   : > { %v2251_v32 = vadd.f32 1.0, %v1601_v24  ;;  %1602 = vrcp.f32 %v2234_v21  ;;  %934 = vmatpush.bf16.msra.mxu2 %v1317_v28  ;;  %920 = vmatpush.bf16.msra.mxu1 %v1333_v40  ;;  %vm598_vm0 = vweird.f32 %v2234_v21  ;;  %v602_v50 = vand.u32 2147483647, %v2234_v21  ;;  %p1629_p12 = scmp.ne.s32.totalorder %s1627_s21, %s1628_s22 }
  0xee   : > { %1604 = vrcp.f32 %v2248_v27  ;;  %947 = vmatpush.bf16.msra.mxu3 %v1321_v39  ;;  %v604_v51 = vand.u32 2147483648, %v2234_v21  ;;  %v619_v55 = vand.u32 2147483648, %v2248_v27  ;;  %vm613_vm2 = vweird.f32 %v2248_v27 }
  0xef   : > { %1606 = vrcp.f32 %v2251_v32  ;;  %v617_v60 = vand.u32 2147483647, %v2248_v27  ;;  %vm603_vm5 = vcmp.eq.f32.partialorder %v602_v50, 8.507059e+37  ;;  %vm628_vm8 = vweird.f32 %v2251_v32  ;;  %p1630_p13 = pnand %p1629_p12, %p1816_p5 }
  0xf0   : > { %953 = vmatpush.bf16.msrb.mxu0 %v1465_v13  ;;  %1608 = vtanh.f32 %v579_v37  ;;  %v605_v0 = vor.u32 1.1754944e-38, %v604_v51  ;;  %v620_v5 = vor.u32 1.1754944e-38, %v619_v55  ;;  %v634_v19 = vand.u32 2147483648, %v2251_v32 }
  0xf1   : > { %921 = vmatpush.bf16.msra.mxu1 %v1313_v46  ;;  %vm618_vm7 = vcmp.eq.f32.partialorder %v617_v60, 8.507059e+37  ;;  %v632_v22 = vand.u32 2147483647, %v2251_v32  ;;  %v1325_v24 = vor.u32 %v1511_v18, %v1324_v17  ;;  %p1631_p0 = pneg %p1630_p13 }
  0xf2   : > { %v635_v25 = vor.u32 1.1754944e-38, %v634_v19 }
  0xf3   : > { %v1603_v45 = vpop.eup %1602  ;;  %vm633_vm11 = vcmp.eq.f32.partialorder %v632_v22, 8.507059e+37 }
  0xf4   : > { %954 = vmatpush.bf16.msrb.mxu0 %v1445_v16  ;;  %v1605_v47 = vpop.eup %1604  ;;  %v594_v48 = vmul.f32 %v1603_v45, %v2234_v21  ;;  %vm599_vm1 = vweird.f32 %v1603_v45 }
  0xf5   : > { %v2282_v49 = vpop.eup %1606  ;;  %v609_v52 = vmul.f32 %v1605_v47, %v2248_v27  ;;  %vm614_vm3 = vweird.f32 %v1605_v47  ;;  %vm2300_vm4 = vmor %vm598_vm0, %vm599_vm1 }
  0xf6   : > { %v595_v54 = vsub.f32 1.0, %v594_v48  ;;  %v624_v56 = vmul.f32 %v2282_v49, %v2251_v32  ;;  %v1609_v3 = vpop.eup %1608  ;;  %vm615_vm6 = vmor %vm613_vm2, %vm614_vm3  ;;  %vm629_vm9 = vweird.f32 %v2282_v49 }
  0xf7   : > { %v610_v59 = vsub.f32 1.0, %v609_v52  ;;  %vm630_vm10 = vmor %vm628_vm8, %vm629_vm9 }
  0xf8   : > { %955 = vmatpush.bf16.msrb.mxu0 %v1425_v29  ;;  %v596_v61 = vmul.f32 %v1603_v45, %v595_v54  ;;  %v625_v62 = vsub.f32 1.0, %v624_v56 }
  0xf9   : > { %v611_v1 = vmul.f32 %v1605_v47, %v610_v59 }
  0xfa   : > { %v597_v4 = vadd.f32 %v1603_v45, %v596_v61  ;;  %v626_v10 = vmul.f32 %v2282_v49, %v625_v62 }
  0xfb   : > { %v612_v8 = vadd.f32 %v1605_v47, %v611_v1 }
  0xfc   : > { %956 = vmatpush.bf16.msrb.mxu0 %v1405_v38  ;;  %v601_v9 = vsel %vm2300_vm4, %v1603_v45, %v597_v4  ;;  %v627_v21 = vadd.f32 %v2282_v49, %v626_v10 }
  0xfd   : > { %v606_v12 = vsel %vm603_vm5, %v605_v0, %v601_v9  ;;  %v616_v13 = vsel %vm615_vm6, %v1605_v47, %v612_v8 }
  0xfe   : > { %v621_v15 = vsel %vm618_vm7, %v620_v5, %v616_v13  ;;  %v640_v16 = vmul.f32 %v1609_v3, %v606_v12  ;;  %v631_v26 = vsel %vm630_vm10, %v2282_v49, %v627_v21 }
  0xff   : > { %v639_v20 = vmul.f32 %v638_v11, %v621_v15  ;;  %v636_v27 = vsel %vm633_vm11, %v635_v25, %v631_v26 }
 0x100   : > { %957 = vmatpush.bf16.msrb.mxu0 %v1385_v53 }
 0x101   : > { %v641_v23 = vadd.f32 %v640_v16, %v639_v20 }
 0x103   : > { %1610 = vtanh.f32 %v641_v23  ;;  %968 = vst [vmem:[#allocation2] sm:$0xff] %v641_v23 }
 0x104   : > { %958 = vmatpush.bf16.msrb.mxu0 %v1365_v2  ;;  %973 = vst [vmem:[%s288_s8] sm:$0xff] %v641_v23 }
 0x108   : > { %959 = vmatpush.bf16.msrb.mxu0 %v1345_v14 }
 0x109   : > { %v1611_v28 = vpop.eup %1610 }
 0x10a   : > { %v643_v29 = vmul.f32 %v1611_v28, %v636_v27 }
 0x10c   : > { %960 = vmatpush.bf16.msrb.mxu0 %v1325_v24  ;;  %v644_v30 = vpack.c.bf16 %v643_v29, %v643_v29  ;;  %974 = vst [vmem:[%s2426_s13] sm:$0xff] %v643_v29  ;;  %s1632_s13 = scalar_lea.hbm %s2415_s6, 64 }
 0x10d   : > { %p1634_p2 = scmp.lt.s32.totalorder %s1632_s13, %s1628_s22 }
 0x10e   : > { %909 = vmatmul.bf16.vlgmr.msra.gmra.mxu0 %v644_v30  ;;  %935 = vmatmul.bf16.vlgmr.msra.gmra.mxu2 %v644_v30 }
 0x10f   : > { %948 = vmatmul.bf16.vlgmr.msra.gmra.mxu3 %v644_v30  ;;  %922 = vmatmul.bf16.vlgmr.msra.gmra.mxu1 %v644_v30  ;;  %p1635_p3 = por %p1634_p2, %p1633_p1 }
 0x111   : > { %p1636_p4 = pnand %p1635_p3, %p1631_p0 }
 0x11e   : > { %961 = vmatmul.bf16.vlgmr.msrb.gmra.mxu0 %v644_v30 }
 0x11f   : > { %1639 = shalt.err (!%p1636_p4)
}
 0x120   : > { %1548 = dma.vmem_to_hbm [thread:$0]  (%p1816_p5), %s1014_s17, 128, %s1016_s19, %s2339_s9  }
 0x121   : > { %s997_s18 = scalar_lea.hbm %s2414_s5, %s2331_s29  ;;  %s999_s28 = sshll.u32 %s288_s8, 4  ;;  %s1000_s28 = int_to_ptr.vmem [resolvable:$true] %s999_s28 }
 0x122   : > { %s1001_s10 = sshll.u32 %s997_s18, 4  ;;  %s2428_s21 = sand.u32 1, %s1726_s25   ;;  %s1002_s10 = int_to_ptr.hbm [resolvable:$true] %s1001_s10 }
 0x123   : > { %s977_s22 = scalar_lea.sflag [#allocation5], %s2428_s21  ;;  %s1654_s13 = sshra.s32 %s1002_s10, 4  ;;  %s1655_s13 = int_to_ptr.hbm [resolvable:$true] %s1654_s13 }
 0x124   : > { %s1656_s15 = scalar_lea.hbm %s1655_s13, 8  ;;  %s1660_s19 = scalar_lea.hbm %s2414_s5, 64 }
 0x125   : > { %p1657_p7 = scmp.ne.s32.totalorder %s1655_s13, %s1656_s15  ;;  %p1661_p10 = scmp.lt.s32.totalorder %s1655_s13, %s2414_s5 }
 0x126   : > { %p1662_p11 = scmp.lt.s32.totalorder %s1660_s19, %s1656_s15 }
 0x127   : > { %p1658_p8 = pnand %p1657_p7, %p1816_p5 }
 0x128   : > { %p1663_p12 = por %p1662_p11, %p1661_p10 }
 0x129   : > { %p1659_p9 = pneg %p1658_p8 }
 0x12b   : > { %p1664_p13 = pnand %p1663_p12, %p1659_p9 }
 0x12d   : > { %1667 = shalt.err (!%p1664_p13)
}
 0x12e   : > { %1547 = dma.vmem_to_hbm [thread:$0]  (%p1816_p5), %s1000_s28, 128, %s1002_s10, %s977_s22   ;;  %v966_v38 = vld [vmem:[%s1841_s23] sm:$0xff] }
 0x12f   : > { %s1025_s21 = scalar_lea.hbm %s2416_s7, %s2331_s29  ;;  %s2429_s13 = scalar_lea.vmem [#allocation8], %s1830_s14 }
 0x130   : > { %s1027_s28 = sshll.u32 %s2429_s13, 4  ;;  %s1029_s10 = sshll.u32 %s1025_s21, 4  ;;  %s1028_s28 = int_to_ptr.vmem [resolvable:$true] %s1027_s28  ;;  %s1030_s10 = int_to_ptr.hbm [resolvable:$true] %s1029_s10 }
 0x131   : > { %s2430_s22 = smov %s2429_s13  ;;  %s1682_s15 = sshra.s32 %s1030_s10, 4  ;;  %s1683_s15 = int_to_ptr.hbm [resolvable:$true] %s1682_s15 }
 0x132   : > { %s1684_s20 = scalar_lea.hbm %s1683_s15, 8  ;;  %s1688_s23 = scalar_lea.hbm %s2416_s7, 64 }
 0x133   : > { %p1685_p0 = scmp.ne.s32.totalorder %s1683_s15, %s1684_s20  ;;  %p1689_p3 = scmp.lt.s32.totalorder %s1683_s15, %s2416_s7 }
 0x134   : > { %p1690_p4 = scmp.lt.s32.totalorder %s1688_s23, %s1684_s20 }
 0x135   : > { %p1686_p1 = pnand %p1685_p0, %p1816_p5 }
 0x136   : > { %p1691_p7 = por %p1690_p4, %p1689_p3 }
 0x137   : > { %p1687_p2 = pneg %p1686_p1 }
 0x139   : > { %p1692_p8 = pnand %p1691_p7, %p1687_p2 }
 0x18b   : > { %v910_v31 = vpop.f32.mrf.mxu0 }
 0x18c   : > { %969 = vst [vmem:[#allocation3 + $0x10] sm:$0xff] %v910_v31  ;;  %v923_v32 = vpop.f32.mrf.mxu1 }
 0x18d   : > { %970 = vst [vmem:[#allocation3] sm:$0xff] %v923_v32 }
 0x191   : > { %v936_v33 = vpop.f32.mrf.mxu2 }
 0x192   : > { %971 = vst [vmem:[#allocation3 + $0x18] sm:$0xff] %v936_v33  ;;  %v949_v34 = vpop.f32.mrf.mxu3 }
 0x193   : > { %v912_v35 = vpop.f32.mrf.mxu0  ;;  %972 = vst [vmem:[#allocation3 + $0x8] sm:$0xff] %v949_v34 }
 0x194   : > { %v925_v36 = vpop.f32.mrf.mxu1 }
 0x199   : > { %v938_v37 = vpop.f32.mrf.mxu2 }
 0x19a   : > { %v951_v39 = vpop.f32.mrf.mxu3 }
 0x19b   : > { %v962_v40 = vpop.f32.mrf.mxu0 }
 0x19c   : > { %v967_v41 = vadd.f32 %v966_v38, %v962_v40 }
 0x19e   : > { %975 = vst [vmem:[%s2430_s22] sm:$0xff] %v967_v41 }
 0x19f   : > { %1695 = shalt.err (!%p1692_p8)
}
 0x1a0   : > { %1549 = dma.vmem_to_hbm [thread:$0]  (%p1816_p5), %s1028_s28, 128, %s1030_s10, %s2339_s9  }
 0x1a3   : > { %v964_v42 = vpop.f32.mrf.mxu0 }
 0x1a4 PF: > { %p1563_p9 = scmp.ge.s32.totalorder %s1734_s27, 2  ;;  %s1041_s14 = sand.u32 1, %s1722_s24  }
 0x1a5   : > { %s1042_s16 = scalar_lea.sflag [#allocation5], %s1041_s14 }
 0x1a6   : > { %p1554_p10 = pnand %p1563_p9, %p1820_p6 }
 0x1a8   : > { %p1555_p11 = pneg %p1554_p10 }
 0x1aa   : > { %1713 = dma.done.wait (%p1555_p11), %s1042_s16, 128  }
 0x1ab   : > { %1715 = vsyncadd (%p1555_p11), %s1042_s16, 4294967168  ;;  %s2431_s8 = sadd.s32 4294967294, %s1734_s27  }
 0x1ac   : > { %s1051_s18 = sand.u32 1, %s2431_s8  }
 0x1ad   : > { %s1052_s21 = scalar_lea.sflag [#allocation7], %s1051_s18 }
 0x1ae   : > { %1717 = dma.done.wait (%p1555_p11), %s1052_s21, 256  }
 0x1af   : > { %1719 = vsyncadd (%p1555_p11), %s1052_s21, 4294967040  ;;  %s2432_s11 = sld [smem:[#allocation11_spill]]  ;;  %p21_p5 = scmp.ge.s32.totalorder %s1801_s30, 10  }
 0x1b0   : > { %s2433_s26 = sld [smem:[#allocation12_spill]]  ;;  %s2434_s24 = smov %s1726_s25 }
 0x1b1   : > { %s2436_s27 = smov %s1801_s30  ;;  %23 = sbr.rel (!%p21_p5) target bundleno = 5 (0x5), region = 114 }
 0x1b5   : > { %s2435_s25 = smov %s2432_s11 }
 0x1b6   :  { %1068 = vsyncpa [#allocation5], 1 }
 0x1b7   :  { %1070 = vsyncpa [#allocation5 + $0x1], 1 }
 0x1b8   :  { %1071 = vsyncpa [#allocation7], 1 }
 0x1b9   :  { %1073 = vsyncpa [#allocation7 + $0x1], 1 }

// kernel: lstm_layer_seq_forward.2
= control target key start
LH: loop header
LB: loop body
LE: loop exit
PB: predicated region body
PF: predicated region fallthrough
CT: control target
= control target key end

     0   :  { %v1862_v7 = vmov 128.0   ;;  %s2786_s0 = inlined_call_operand.vmem [shape: f32[64,128], index: 0, kind: input, shape index: {}]   ;;  %s2787_s5 = inlined_call_operand.vmem [shape: f32[1,128], index: 5, kind: input, shape index: {}]   ;;  %s2788_s6 = inlined_call_operand.vmem [shape: f32[1,128], index: 6, kind: input, shape index: {}]   ;;  %s2789_s7 = inlined_call_operand.vmem [shape: f32[1,128], index: 7, kind: input, shape index: {}]   ;;  %s2790_s8 = inlined_call_operand.vmem [shape: f32[1,128], index: 8, kind: input, shape index: {}]   ;;  %s2791_s1 = inlined_call_operand.vmem [shape: bf16[128,512], index: 1, kind: input, shape index: {}]   ;;  %s2792_s3 = inlined_call_operand.vmem [shape: bf16[128,512], index: 3, kind: input, shape index: {}]   ;;  %s2793_s2 = inlined_call_operand.vmem [shape: f32[1,512], index: 2, kind: input, shape index: {}]   ;;  %s2794_s9 = inlined_call_operand.vmem [shape: f32[64,512], index: 9, kind: output, shape index: {0}]   ;;  %s2795_s4 = inlined_call_operand.vmem [shape: bf16[512,128], index: 4, kind: input, shape index: {}]   ;;  %s2796_s10 = inlined_call_operand.vmem [shape: f32[64,128], index: 10, kind: output, shape index: {1}]  }
   0x1   :  { %v38_v0 = vld [vmem:[%s2786_s0 + $0x20] sm:$0xff]  ;;  %v36_v1 = vld [vmem:[%s2786_s0 + $0x10] sm:$0xff]  ;;  %v39_v3 = vld [vmem:[%s2786_s0 + $0x28] sm:$0xff]  ;;  %1844 = vrcp.f32 %v1862_v7 }
   0x2   :  { %v34_v2 = vld [vmem:[%s2786_s0] sm:$0xff]  ;;  %50 = vadd.xlane.f32.xlu2 %v38_v0  ;;  %46 = vadd.xlane.f32.xlu1 %v36_v1  ;;  %v37_v4 = vld [vmem:[%s2786_s0 + $0x18] sm:$0xff]  ;;  %v35_v5 = vld [vmem:[%s2786_s0 + $0x8] sm:$0xff] }
   0x3   :  { %42 = vadd.xlane.f32.xlu0 %v34_v2  ;;  %v40_v6 = vld [vmem:[%s2786_s0 + $0x30] sm:$0xff]  ;;  %v1959_v30 = vld [vmem:[%s2786_s0 + $0x38] sm:$0xff]  ;;  %v1473_v43 = vld [vmem:[%s2791_s1 + $0xe0] sm:$0xf] }
   0x4   :  { %v1773_v44 = vld [vmem:[%s2791_s1 + $0xec] sm:$0xf0]  ;;  %v1771_v45 = vld [vmem:[%s2791_s1 + $0xe4] sm:$0xf]  ;;  %v1475_v47 = vld [vmem:[%s2791_s1 + $0xf0] sm:$0xf0] }
   0x5   :  { %v1474_v46 = vor.u32 %v1773_v44, %v1473_v43  ;;  %v1481_v48 = vld [vmem:[%s2791_s1 + $0xe8] sm:$0xf]  ;;  %v1774_v49 = vld [vmem:[%s2791_s1 + $0xf4] sm:$0xf0]  ;;  %v1478_v50 = vor.u32 %v1771_v45, %v1475_v47  ;;  %v1772_v52 = vld [vmem:[%s2791_s1 + $0xec] sm:$0xf] }
   0x6   :  { %v1482_v51 = vor.u32 %v1774_v49, %v1481_v48  ;;  %v1483_v53 = vld [vmem:[%s2791_s1 + $0xf8] sm:$0xf0]  ;;  %v1457_v55 = vld [vmem:[%s2791_s1 + $0xc0] sm:$0xf]  ;;  %v1769_v56 = vld [vmem:[%s2791_s1 + $0xcc] sm:$0xf0] }
   0x7   :  { %v1845_v8 = vpop.eup %1844  ;;  %467 = vmatpush.bf16.msra.mxu0 %v1474_v46  ;;  %v1486_v54 = vor.u32 %v1772_v52, %v1483_v53  ;;  %496 = vmatpush.bf16.msra.mxu1 %v1478_v50  ;;  %v1767_v57 = vld [vmem:[%s2791_s1 + $0xc4] sm:$0xf]  ;;  %v1458_v58 = vor.u32 %v1769_v56, %v1457_v55  ;;  %v1459_v59 = vld [vmem:[%s2791_s1 + $0xd0] sm:$0xf0]  ;;  %v1465_v60 = vld [vmem:[%s2791_s1 + $0xc8] sm:$0xf] }
   0x8   :  { %v59_v9 = vmul.f32 128.0, %v1845_v8  ;;  %vm63_vm0 = vweird.f32 %v1845_v8  ;;  %525 = vmatpush.bf16.msra.mxu2 %v1482_v51  ;;  %v1770_v61 = vld [vmem:[%s2791_s1 + $0xd4] sm:$0xf0]  ;;  %v1462_v62 = vor.u32 %v1767_v57, %v1459_v59  ;;  %v1443_v7 = vld [vmem:[%s2791_s1 + $0xb0] sm:$0xf0] }
   0x9   :  { %554 = vmatpush.bf16.msra.mxu3 %v1486_v54  ;;  %v1466_v63 = vor.u32 %v1770_v61, %v1465_v60  ;;  %v1756_v45 = vld [vmem:[%s2791_s1 + $0x6c] sm:$0xf]  ;;  %v1419_v46 = vld [vmem:[%s2791_s1 + $0x78] sm:$0xf0]  ;;  %v1393_v48 = vld [vmem:[%s2791_s1 + $0x40] sm:$0xf] }
   0xa   :  { %52 = vadd.xlane.f32.xlu2 %v39_v3  ;;  %48 = vadd.xlane.f32.xlu1 %v37_v4  ;;  %v60_v10 = vsub.f32 1.0, %v59_v9  ;;  %v1766_v9 = vld [vmem:[%s2791_s1 + $0xb4] sm:$0xf0]  ;;  %v1422_v47 = vor.u32 %v1756_v45, %v1419_v46  ;;  %v1753_v49 = vld [vmem:[%s2791_s1 + $0x4c] sm:$0xf0] }
   0xb   :  { %44 = vadd.xlane.f32.xlu0 %v35_v5  ;;  %468 = vmatpush.bf16.msra.mxu0 %v1458_v58  ;;  %v1751_v50 = vld [vmem:[%s2791_s1 + $0x44] sm:$0xf]  ;;  %v1394_v51 = vor.u32 %v1753_v49, %v1393_v48  ;;  %v1395_v52 = vld [vmem:[%s2791_s1 + $0x50] sm:$0xf0]  ;;  %v1401_v53 = vld [vmem:[%s2791_s1 + $0x48] sm:$0xf] }
   0xc   :  { %v61_v11 = vmul.f32 %v1845_v8, %v60_v10  ;;  %497 = vmatpush.bf16.msra.mxu1 %v1462_v62  ;;  %526 = vmatpush.bf16.msra.mxu2 %v1466_v63  ;;  %v1754_v54 = vld [vmem:[%s2791_s1 + $0x54] sm:$0xf0]  ;;  %v1398_v55 = vor.u32 %v1751_v50, %v1395_v52  ;;  %v1752_v57 = vld [vmem:[%s2791_s1 + $0x4c] sm:$0xf]  ;;  %v1403_v58 = vld [vmem:[%s2791_s1 + $0x58] sm:$0xf0] }
   0xd   :  { %v1402_v56 = vor.u32 %v1754_v54, %v1401_v53  ;;  %v1406_v59 = vor.u32 %v1752_v57, %v1403_v58  ;;  %v1377_v60 = vld [vmem:[%s2791_s1 + $0x20] sm:$0xf]  ;;  %v1749_v61 = vld [vmem:[%s2791_s1 + $0x2c] sm:$0xf0]  ;;  %v1747_v62 = vld [vmem:[%s2791_s1 + $0x24] sm:$0xf] }
   0xe   :  { %v62_v12 = vadd.f32 %v1845_v8, %v61_v11  ;;  %v1378_v63 = vor.u32 %v1749_v61, %v1377_v60 }
  0x10   :  { %v1939_v13 = vsel %vm63_vm0, %v1845_v8, %v62_v12  ;;  %v1449_v8 = vld [vmem:[%s2791_s1 + $0xa8] sm:$0xf]  ;;  %v1764_v12 = vld [vmem:[%s2791_s1 + $0xac] sm:$0xf] }
  0x11   :  { %v1450_v11 = vor.u32 %v1766_v9, %v1449_v8 }
  0x12   :  { %54 = vadd.xlane.f32.xlu2 %v40_v6 }
  0x13   :  { %527 = vmatpush.bf16.msra.mxu2 %v1450_v11  ;;  %v1745_v11 = vld [vmem:[%s2791_s1 + $0xc] sm:$0xf0] }
  0x75   :  { %v51_v14 = vpop.xlane.xlu2 %50  ;;  %v47_v15 = vpop.xlane.xlu1 %46 }
  0x76   :  { %v43_v16 = vpop.xlane.xlu0 %42  ;;  %v69_v26 = vmul.f32 %v1939_v13, %v51_v14  ;;  %v67_v27 = vmul.f32 %v1939_v13, %v47_v15  ;;  %v1451_v14 = vld [vmem:[%s2791_s1 + $0xb8] sm:$0xf0] }
  0x77   :  { %v65_v17 = vmul.f32 %v1939_v13, %v43_v16  ;;  %v1454_v15 = vor.u32 %v1764_v12, %v1451_v14  ;;  %v1425_v16 = vld [vmem:[%s2791_s1 + $0x80] sm:$0xf]  ;;  %v1743_v12 = vld [vmem:[%s2791_s1 + $0x4] sm:$0xf] }
  0x78   :  { %v1963_v32 = vsub.f32 %v38_v0, %v69_v26  ;;  %v1965_v33 = vsub.f32 %v36_v1, %v67_v27  ;;  %v1768_v0 = vld [vmem:[%s2791_s1 + $0xcc] sm:$0xf]  ;;  %v1467_v1 = vld [vmem:[%s2791_s1 + $0xd8] sm:$0xf0] }
  0x79   :  { %v1942_v18 = vsub.f32 %v34_v2, %v65_v17  ;;  %v1470_v2 = vor.u32 %v1768_v0, %v1467_v1  ;;  %v1761_v17 = vld [vmem:[%s2791_s1 + $0x8c] sm:$0xf0]  ;;  %v1760_v27 = vld [vmem:[%s2791_s1 + $0x8c] sm:$0xf]  ;;  %v1379_v0 = vld [vmem:[%s2791_s1 + $0x30] sm:$0xf0] }
  0x7a   :  { %v85_v38 = vmul.f32 %v1963_v32, %v1963_v32  ;;  %v83_v39 = vmul.f32 %v1965_v33, %v1965_v33  ;;  %v1385_v1 = vld [vmem:[%s2791_s1 + $0x28] sm:$0xf] }
  0x7b   :  { %v81_v19 = vmul.f32 %v1942_v18, %v1942_v18  ;;  %555 = vmatpush.bf16.msra.mxu3 %v1470_v2  ;;  %v1750_v2 = vld [vmem:[%s2791_s1 + $0x34] sm:$0xf0] }
  0x7d   :  { %89 = vadd.xlane.f32.xlu0 %v81_v19  ;;  %v53_v20 = vpop.xlane.xlu2 %52  ;;  %v49_v21 = vpop.xlane.xlu1 %48  ;;  %v1759_v19 = vld [vmem:[%s2791_s1 + $0x84] sm:$0xf] }
  0x7e   :  { %v68_v22 = vmul.f32 %v1939_v13, %v49_v21  ;;  %v45_v23 = vpop.xlane.xlu0 %44  ;;  %v70_v37 = vmul.f32 %v1939_v13, %v53_v20  ;;  %v1426_v20 = vor.u32 %v1761_v17, %v1425_v16  ;;  %v1427_v21 = vld [vmem:[%s2791_s1 + $0x90] sm:$0xf0]  ;;  %v1369_v17 = vld [vmem:[%s2791_s1 + $0x8] sm:$0xf] }
  0x7f   :  { %v66_v24 = vmul.f32 %v1939_v13, %v45_v23  ;;  %556 = vmatpush.bf16.msra.mxu3 %v1454_v15  ;;  %v1762_v23 = vld [vmem:[%s2791_s1 + $0x94] sm:$0xf0]  ;;  %v1363_v16 = vld [vmem:[%s2791_s1 + $0x10] sm:$0xf0] }
  0x80   :  { %v1948_v25 = vsub.f32 %v37_v4, %v68_v22  ;;  %v1978_v41 = vsub.f32 %v39_v3, %v70_v37  ;;  %v1441_v3 = vld [vmem:[%s2791_s1 + $0xa0] sm:$0xf]  ;;  %v1765_v4 = vld [vmem:[%s2791_s1 + $0xac] sm:$0xf0]  ;;  %v1433_v22 = vld [vmem:[%s2791_s1 + $0x88] sm:$0xf] }
  0x81   :  { %v1952_v28 = vsub.f32 %v35_v5, %v66_v24  ;;  %v1763_v5 = vld [vmem:[%s2791_s1 + $0xa4] sm:$0xf]  ;;  %v1430_v24 = vor.u32 %v1759_v19, %v1427_v21  ;;  %v1434_v26 = vor.u32 %v1762_v23, %v1433_v22  ;;  %v1366_v19 = vor.u32 %v1743_v12, %v1363_v16  ;;  %v1744_v21 = vld [vmem:[%s2791_s1 + $0xc] sm:$0xf]  ;;  %v1371_v22 = vld [vmem:[%s2791_s1 + $0x18] sm:$0xf0] }
  0x82   :  { %v84_v29 = vmul.f32 %v1948_v25, %v1948_v25  ;;  %v86_v42 = vmul.f32 %v1978_v41, %v1978_v41  ;;  %v1446_v10 = vor.u32 %v1763_v5, %v1443_v7  ;;  %v1755_v37 = vld [vmem:[%s2791_s1 + $0x64] sm:$0xf]  ;;  %v1386_v5 = vor.u32 %v1750_v2, %v1385_v1  ;;  %v1387_v7 = vld [vmem:[%s2791_s1 + $0x38] sm:$0xf0] }
  0x83   :  { %v82_v31 = vmul.f32 %v1952_v28, %v1952_v28  ;;  %528 = vmatpush.bf16.msra.mxu2 %v1434_v26  ;;  %v1595_v12 = vld [vmem:[%s2792_s3 + $0xd8] sm:$0xf0] }
  0x84   :  { %95 = vadd.xlane.f32.xlu2 %v84_v29  ;;  %498 = vmatpush.bf16.msra.mxu1 %v1446_v10  ;;  %v1435_v29 = vld [vmem:[%s2791_s1 + $0x98] sm:$0xf0]  ;;  %v1361_v10 = vld [vmem:[%s2791_s1] sm:$0xf] }
  0x85   :  { %56 = vadd.xlane.f32.xlu0 %v1959_v30  ;;  %91 = vadd.xlane.f32.xlu1 %v82_v31  ;;  %v55_v34 = vpop.xlane.xlu2 %54  ;;  %v1438_v31 = vor.u32 %v1760_v27, %v1435_v29  ;;  %v1362_v15 = vor.u32 %v1745_v11, %v1361_v10 }
  0x86   :  { %v71_v35 = vmul.f32 %v1939_v13, %v55_v34  ;;  %v1409_v34 = vld [vmem:[%s2791_s1 + $0x60] sm:$0xf] }
  0x87   :  { %557 = vmatpush.bf16.msra.mxu3 %v1438_v31 }
  0x88   :  { %v1969_v36 = vsub.f32 %v40_v6, %v71_v35  ;;  %v1442_v6 = vor.u32 %v1765_v4, %v1441_v3  ;;  %499 = vmatpush.bf16.msra.mxu1 %v1430_v24  ;;  %v1757_v35 = vld [vmem:[%s2791_s1 + $0x6c] sm:$0xf0]  ;;  %v1382_v4 = vor.u32 %v1747_v62, %v1379_v0  ;;  %v1374_v24 = vor.u32 %v1744_v21, %v1371_v22  ;;  %v2229_v22 = vld [vmem:[%s2790_s8] ss:$0 sm:$0xff] }
  0x8a   :  { %v87_v40 = vmul.f32 %v1969_v36, %v1969_v36  ;;  %469 = vmatpush.bf16.msra.mxu0 %v1442_v6  ;;  %v1748_v6 = vld [vmem:[%s2791_s1 + $0x2c] sm:$0xf] }
  0x8b   :  { %558 = vmatpush.bf16.msra.mxu3 %v1422_v47  ;;  %v1390_v9 = vor.u32 %v1748_v6, %v1387_v7 }
  0x8c   :  { %101 = vadd.xlane.f32.xlu2 %v87_v40  ;;  %v1417_v40 = vld [vmem:[%s2791_s1 + $0x68] sm:$0xf] }
  0x8d   :  { %97 = vadd.xlane.f32.xlu0 %v85_v38  ;;  %93 = vadd.xlane.f32.xlu1 %v83_v39  ;;  %v1410_v38 = vor.u32 %v1757_v35, %v1409_v34  ;;  %v1411_v39 = vld [vmem:[%s2791_s1 + $0x70] sm:$0xf0] }
  0x8e   :  { %470 = vmatpush.bf16.msra.mxu0 %v1426_v20  ;;  %v1414_v43 = vor.u32 %v1755_v37, %v1411_v39  ;;  %v1746_v20 = vld [vmem:[%s2791_s1 + $0x14] sm:$0xf0] }
  0x8f   :  { %559 = vmatpush.bf16.msra.mxu3 %v1406_v59  ;;  %v1370_v23 = vor.u32 %v1746_v20, %v1369_v17  ;;  %v2223_v20 = vld [vmem:[%s2788_s6] ss:$0 sm:$0xff] }
  0x90   :  { %500 = vmatpush.bf16.msra.mxu1 %v1414_v43 }
  0x92   :  { %471 = vmatpush.bf16.msra.mxu0 %v1410_v38 }
  0x93   :  { %560 = vmatpush.bf16.msra.mxu3 %v1390_v9  ;;  %v2207_v9 = vld [vmem:[%s2789_s7] ss:$0 sm:$0xff] }
  0x94   :  { %501 = vmatpush.bf16.msra.mxu1 %v1398_v55 }
  0x95   :  { %99 = vadd.xlane.f32.xlu1 %v86_v42  ;;  %v1758_v42 = vld [vmem:[%s2791_s1 + $0x74] sm:$0xf0] }
  0x96   :  { %v1418_v44 = vor.u32 %v1758_v42, %v1417_v40  ;;  %472 = vmatpush.bf16.msra.mxu0 %v1394_v51 }
  0x97   :  { %561 = vmatpush.bf16.msra.mxu3 %v1374_v24 }
  0x98   :  { %529 = vmatpush.bf16.msra.mxu2 %v1418_v44  ;;  %502 = vmatpush.bf16.msra.mxu1 %v1382_v4 }
  0x9a   :  { %473 = vmatpush.bf16.msra.mxu0 %v1378_v63 }
  0x9c   :  { %530 = vmatpush.bf16.msra.mxu2 %v1402_v56  ;;  %503 = vmatpush.bf16.msra.mxu1 %v1366_v19 }
  0x9e   :  { %474 = vmatpush.bf16.msra.mxu0 %v1362_v15 }
  0xa0   :  { %531 = vmatpush.bf16.msra.mxu2 %v1386_v5 }
  0xa4   :  { %532 = vmatpush.bf16.msra.mxu2 %v1370_v23 }
  0xf0   :  { %v90_v3 = vpop.xlane.xlu0 %89 }
  0xf1   :  { %v105_v8 = vmul.f32 %v90_v3, %v1939_v13 }
  0xf3   :  { %v113_v14 = vadd.f32 1e-06, %v105_v8  ;;  %v2202_v8 = vld [vmem:[%s2787_s5] ss:$0 sm:$0xff] }
  0xf5   :  { %1846 = vrsqrt.f32 %v113_v14  ;;  %vm127_vm2 = vweird.f32 %v113_v14 }
  0xf7   :  { %v96_v26 = vpop.xlane.xlu2 %95 }
  0xf8   :  { %v108_v27 = vmul.f32 %v96_v26, %v1939_v13  ;;  %v92_v29 = vpop.xlane.xlu1 %91  ;;  %v57_v31 = vpop.xlane.xlu0 %56 }
  0xf9   :  { %v106_v34 = vmul.f32 %v92_v29, %v1939_v13  ;;  %v72_v35 = vmul.f32 %v1939_v13, %v57_v31 }
  0xfa   :  { %v116_v37 = vadd.f32 1e-06, %v108_v27 }
  0xfb   :  { %v1847_v38 = vpop.eup %1846  ;;  %v114_v39 = vadd.f32 1e-06, %v106_v34  ;;  %v2179_v40 = vsub.f32 %v1959_v30, %v72_v35 }
  0xfc   :  { %v122_v42 = vmul.f32 %v1847_v38, %v113_v14  ;;  %1848 = vrsqrt.f32 %v116_v37  ;;  %vm128_vm1 = vweird.f32 %v1847_v38  ;;  %vm157_vm6 = vweird.f32 %v116_v37 }
  0xfd   :  { %1850 = vrsqrt.f32 %v114_v39  ;;  %v88_v43 = vmul.f32 %v2179_v40, %v2179_v40  ;;  %vm129_vm3 = vmor %vm127_vm2, %vm128_vm1  ;;  %vm137_vm4 = vweird.f32 %v114_v39 }
  0xfe   :  { %v123_v44 = vmul.f32 %v1847_v38, %v122_v42 }
  0xff   :  { %103 = vadd.xlane.f32.xlu0 %v88_v43 }
 0x100   :  { %v124_v45 = vmul.f32 0.5, %v123_v44  ;;  %v94_v46 = vpop.xlane.xlu1 %93  ;;  %v98_v47 = vpop.xlane.xlu0 %97 }
 0x101   :  { %v107_v48 = vmul.f32 %v94_v46, %v1939_v13  ;;  %v109_v49 = vmul.f32 %v98_v47, %v1939_v13  ;;  %v1585_v47 = vld [vmem:[%s2792_s3 + $0xc0] sm:$0xf] }
 0x102   :  { %v2185_v50 = vpop.eup %1848  ;;  %v125_v51 = vsub.f32 1.5, %v124_v45 }
 0x103   :  { %v1851_v30 = vpop.eup %1850  ;;  %v152_v52 = vmul.f32 %v2185_v50, %v116_v37  ;;  %v115_v53 = vadd.f32 1e-06, %v107_v48  ;;  %v2188_v54 = vadd.f32 1e-06, %v109_v49  ;;  %vm158_vm7 = vweird.f32 %v2185_v50 }
 0x104   :  { %v132_v55 = vmul.f32 %v1851_v30, %v114_v39  ;;  %v126_v56 = vmul.f32 %v1847_v38, %v125_v51  ;;  %vm138_vm5 = vweird.f32 %v1851_v30  ;;  %vm2212_vm9 = vmor %vm157_vm6, %vm158_vm7 }
 0x105   :  { %v153_v57 = vmul.f32 %v2185_v50, %v152_v52  ;;  %1852 = vrsqrt.f32 %v115_v53  ;;  %vm139_vm8 = vmor %vm137_vm4, %vm138_vm5  ;;  %vm147_vm10 = vweird.f32 %v115_v53  ;;  %vm167_vm12 = vweird.f32 %v2188_v54 }
 0x106   :  { %v133_v58 = vmul.f32 %v1851_v30, %v132_v55  ;;  %1854 = vrsqrt.f32 %v2188_v54  ;;  %v130_v62 = vsel %vm129_vm3, %v1847_v38, %v126_v56  ;;  %v1804_v56 = vld [vmem:[%s2792_s3 + $0xec] sm:$0xf] }
 0x107   :  { %v154_v59 = vmul.f32 0.5, %v153_v57  ;;  %v201_v5 = vmul.f32 %v130_v62, %v1942_v18  ;;  %v1611_v57 = vld [vmem:[%s2792_s3 + $0xf8] sm:$0xf0]  ;;  %v1802_v62 = vld [vmem:[%s2792_s3 + $0xd4] sm:$0xf0] }
 0x108   :  { %v134_v60 = vmul.f32 0.5, %v133_v58  ;;  %v100_v61 = vpop.xlane.xlu1 %99  ;;  %v1593_v58 = vld [vmem:[%s2792_s3 + $0xc8] sm:$0xf] }
 0x109   :  { %v155_v63 = vsub.f32 1.5, %v154_v59  ;;  %v110_v0 = vmul.f32 %v100_v61, %v1939_v13  ;;  %v213_v19 = vmul.f32 %v2202_v8, %v201_v5  ;;  %v241_v21 = vmul.f32 %v2207_v9, %v201_v5  ;;  %v1603_v5 = vld [vmem:[%s2792_s3 + $0xf0] sm:$0xf0] }
 0x10a   :  { %v135_v1 = vsub.f32 1.5, %v134_v60  ;;  %v1614_v61 = vor.u32 %v1804_v56, %v1611_v57  ;;  %v1794_v56 = vld [vmem:[%s2792_s3 + $0x94] sm:$0xf0]  ;;  %v1569_v57 = vld [vmem:[%s2792_s3 + $0xa0] sm:$0xf] }
 0x10b   :  { %v1853_v2 = vpop.eup %1852  ;;  %v2194_v3 = vadd.f32 1e-06, %v110_v0  ;;  %v156_v10 = vmul.f32 %v2185_v50, %v155_v63  ;;  %v225_v42 = vadd.f32 %v2223_v20, %v213_v19  ;;  %v253_v43 = vadd.f32 %v2229_v22, %v241_v21  ;;  %v1601_v63 = vld [vmem:[%s2792_s3 + $0xe0] sm:$0xf] }
 0x10c   :  { %v2196_v4 = vpop.eup %1854  ;;  %v136_v6 = vmul.f32 %v1851_v30, %v135_v1  ;;  %v142_v7 = vmul.f32 %v1853_v2, %v115_v53  ;;  %vm148_vm11 = vweird.f32 %v1853_v2  ;;  %v1609_v53 = vld [vmem:[%s2792_s3 + $0xe8] sm:$0xf]  ;;  %894 = vmatpush.bf16.msrb.mxu3 %v1614_v61  ;;  %v1795_v61 = vld [vmem:[%s2792_s3 + $0xa4] sm:$0xf] }
 0x10d   :  { %v162_v11 = vmul.f32 %v2196_v4, %v2188_v54  ;;  %1856 = vrsqrt.f32 %v2194_v3  ;;  %vm2237_vm13 = vmor %vm147_vm10, %vm148_vm11  ;;  %vm168_vm14 = vweird.f32 %v2196_v4  ;;  %vm177_vm0 = vweird.f32 %v2194_v3 }
 0x10e   :  { %v140_v18 = vsel %vm139_vm8, %v1851_v30, %v136_v6  ;;  %v143_v14 = vmul.f32 %v1853_v2, %v142_v7  ;;  %vm2251_vm15 = vmor %vm167_vm12, %vm168_vm14 }
 0x10f   :  { %v202_v15 = vmul.f32 %v140_v18, %v1952_v28  ;;  %v163_v16 = vmul.f32 %v2196_v4, %v162_v11  ;;  %v160_v28 = vsel %vm2212_vm9, %v2185_v50, %v156_v10  ;;  %v1800_v11 = vld [vmem:[%s2792_s3 + $0xcc] sm:$0xf]  ;;  %v1577_v18 = vld [vmem:[%s2792_s3 + $0xa8] sm:$0xf] }
 0x110   :  { %v144_v17 = vmul.f32 0.5, %v143_v14  ;;  %v204_v38 = vmul.f32 %v160_v28, %v1948_v25 }
 0x111   :  { %v164_v23 = vmul.f32 0.5, %v163_v16  ;;  %v214_v24 = vmul.f32 %v2202_v8, %v202_v15  ;;  %v242_v26 = vmul.f32 %v2207_v9, %v202_v15  ;;  %v1598_v15 = vor.u32 %v1800_v11, %v1595_v12  ;;  %v1798_v16 = vld [vmem:[%s2792_s3 + $0xb4] sm:$0xf0]  ;;  %v1555_v12 = vld [vmem:[%s2792_s3 + $0x90] sm:$0xf0] }
 0x112   :  { %v145_v27 = vsub.f32 1.5, %v144_v17  ;;  %v244_v51 = vmul.f32 %v2207_v9, %v204_v38  ;;  %v216_v28 = vmul.f32 %v2202_v8, %v204_v38 }
 0x113   :  { %v165_v31 = vsub.f32 1.5, %v164_v23  ;;  %v226_v34 = vadd.f32 %v2223_v20, %v214_v24  ;;  %v254_v35 = vadd.f32 %v2229_v22, %v242_v26  ;;  %v1857_v37 = vpop.eup %1856  ;;  %v1578_v23 = vor.u32 %v1798_v16, %v1577_v18  ;;  %895 = vmatpush.bf16.msrb.mxu3 %v1598_v15  ;;  %v1788_v18 = vld [vmem:[%s2792_s3 + $0x6c] sm:$0xf]  ;;  %v1529_v16 = vld [vmem:[%s2792_s3 + $0x48] sm:$0xf] }
 0x114   :  { %v146_v39 = vmul.f32 %v1853_v2, %v145_v27  ;;  %v172_v45 = vmul.f32 %v1857_v37, %v2194_v3  ;;  %vm178_vm1 = vweird.f32 %v1857_v37  ;;  %v1805_v3 = vld [vmem:[%s2792_s3 + $0xec] sm:$0xf0]  ;;  %v256_v6 = vadd.f32 %v2229_v22, %v244_v51  ;;  %v1587_v51 = vld [vmem:[%s2792_s3 + $0xd0] sm:$0xf0] }
 0x115   :  { %v166_v44 = vmul.f32 %v2196_v4, %v165_v31  ;;  %v233_v48 = vpack.c.bf16 %v226_v34, %v225_v42  ;;  %v2255_v49 = vpack.c.bf16 %v254_v35, %v253_v43  ;;  %vm2282_vm2 = vmor %vm177_vm0, %vm178_vm1  ;;  %v1602_v10 = vor.u32 %v1805_v3, %v1601_v63  ;;  %v1792_v63 = vld [vmem:[%s2792_s3 + $0x8c] sm:$0xf]  ;;  %v1545_v3 = vld [vmem:[%s2792_s3 + $0x68] sm:$0xf] }
 0x116   :  { %v150_v46 = vsel %vm2237_vm13, %v1853_v2, %v146_v39  ;;  %v173_v50 = vmul.f32 %v1857_v37, %v172_v45  ;;  %v1594_v2 = vor.u32 %v1802_v62, %v1593_v58  ;;  %v228_v29 = vadd.f32 %v2223_v20, %v216_v28  ;;  %v1797_v58 = vld [vmem:[%s2792_s3 + $0xac] sm:$0xf0]  ;;  %v1571_v62 = vld [vmem:[%s2792_s3 + $0xb0] sm:$0xf0] }
 0x117   :  { %v203_v25 = vmul.f32 %v150_v46, %v1965_v33  ;;  %475 = vmatmul.bf16.vlgmr.msra.gmra.mxu0 %v233_v48  ;;  %504 = vmatmul.bf16.vlgmr.msra.gmra.mxu1 %v233_v48  ;;  %v170_v30 = vsel %vm2251_vm15, %v2196_v4, %v166_v44  ;;  %v1806_v33 = vld [vmem:[%s2792_s3 + $0xf4] sm:$0xf0]  ;;  %v1803_v4 = vld [vmem:[%s2792_s3 + $0xe4] sm:$0xf]  ;;  %v102_v44 = vpop.xlane.xlu2 %101  ;;  %v1570_v60 = vor.u32 %v1797_v58, %v1569_v57  ;;  %v1497_v57 = vld [vmem:[%s2792_s3 + $0x8] sm:$0xf] }
 0x118   :  { %v174_v52 = vmul.f32 0.5, %v173_v50  ;;  %533 = vmatmul.bf16.vlgmr.msra.gmra.mxu2 %v233_v48  ;;  %562 = vmatmul.bf16.vlgmr.msra.gmra.mxu3 %v233_v48  ;;  %v1610_v55 = vor.u32 %v1806_v33, %v1609_v53  ;;  %v205_v1 = vmul.f32 %v170_v30, %v1963_v32  ;;  %v1606_v32 = vor.u32 %v1803_v4, %v1603_v5  ;;  %v1801_v48 = vld [vmem:[%s2792_s3 + $0xcc] sm:$0xf0]  ;;  %v1796_v53 = vld [vmem:[%s2792_s3 + $0xac] sm:$0xf] }
 0x119   :  { %v243_v54 = vmul.f32 %v2207_v9, %v203_v25  ;;  %v215_v14 = vmul.f32 %v2202_v8, %v203_v25  ;;  %807 = vmatpush.bf16.msrb.mxu0 %v1602_v10  ;;  %v111_v45 = vmul.f32 %v102_v44, %v1939_v13  ;;  %v1799_v25 = vld [vmem:[%s2792_s3 + $0xc4] sm:$0xf]  ;;  %v1586_v50 = vor.u32 %v1801_v48, %v1585_v47  ;;  %v1579_v33 = vld [vmem:[%s2792_s3 + $0xb8] sm:$0xf0]  ;;  %v1790_v4 = vld [vmem:[%s2792_s3 + $0x74] sm:$0xf0] }
 0x11a   :  { %v175_v59 = vsub.f32 1.5, %v174_v52  ;;  %865 = vmatpush.bf16.msrb.mxu2 %v1610_v55  ;;  %836 = vmatpush.bf16.msrb.mxu1 %v1606_v32  ;;  %v245_v24 = vmul.f32 %v2207_v9, %v205_v1  ;;  %v217_v38 = vmul.f32 %v2202_v8, %v205_v1  ;;  %v1590_v30 = vor.u32 %v1799_v25, %v1587_v51  ;;  %v1793_v10 = vld [vmem:[%s2792_s3 + $0x8c] sm:$0xf0]  ;;  %v1791_v32 = vld [vmem:[%s2792_s3 + $0x84] sm:$0xf] }
 0x11b   :  { %v255_v0 = vadd.f32 %v2229_v22, %v243_v54  ;;  %v227_v26 = vadd.f32 %v2223_v20, %v215_v14  ;;  %v2336_v46 = vadd.f32 1e-06, %v111_v45  ;;  %v1561_v54 = vld [vmem:[%s2792_s3 + $0x88] sm:$0xf]  ;;  %v1582_v55 = vor.u32 %v1796_v53, %v1579_v33  ;;  %v1547_v14 = vld [vmem:[%s2792_s3 + $0x78] sm:$0xf0] }
 0x11c   :  { %v176_v7 = vmul.f32 %v1857_v37, %v175_v59  ;;  %v257_v31 = vadd.f32 %v2229_v22, %v245_v24  ;;  %v229_v42 = vadd.f32 %v2223_v20, %v217_v38  ;;  %v1562_v59 = vor.u32 %v1794_v56, %v1561_v54  ;;  %v1789_v24 = vld [vmem:[%s2792_s3 + $0x6c] sm:$0xf0]  ;;  %v1783_v47 = vld [vmem:[%s2792_s3 + $0x44] sm:$0xf]  ;;  %v1523_v48 = vld [vmem:[%s2792_s3 + $0x50] sm:$0xf0] }
 0x11d   :  { %v2317_v17 = vpack.c.bf16 %v256_v6, %v255_v0  ;;  %v234_v35 = vpack.c.bf16 %v228_v29, %v227_v26  ;;  %1858 = vrsqrt.f32 %v2336_v46  ;;  %808 = vmatpush.bf16.msrb.mxu0 %v1586_v50  ;;  %896 = vmatpush.bf16.msrb.mxu3 %v1582_v55  ;;  %v1574_v1 = vor.u32 %v1795_v61, %v1571_v62  ;;  %v1787_v26 = vld [vmem:[%s2792_s3 + $0x64] sm:$0xf]  ;;  %v1785_v45 = vld [vmem:[%s2792_s3 + $0x4c] sm:$0xf0]  ;;  %v1780_v53 = vld [vmem:[%s2792_s3 + $0x2c] sm:$0xf] }
 0x11e   :  { %v180_v19 = vsel %vm2282_vm2, %v1857_v37, %v176_v7  ;;  %866 = vmatpush.bf16.msrb.mxu2 %v1594_v2  ;;  %837 = vmatpush.bf16.msrb.mxu1 %v1590_v30  ;;  %v1563_v2 = vld [vmem:[%s2792_s3 + $0x98] sm:$0xf0]  ;;  %v1546_v6 = vor.u32 %v1790_v4, %v1545_v3  ;;  %v1553_v7 = vld [vmem:[%s2792_s3 + $0x80] sm:$0xf]  ;;  %v1558_v15 = vor.u32 %v1791_v32, %v1555_v12  ;;  %v1778_v58 = vld [vmem:[%s2792_s3 + $0x14] sm:$0xf0]  ;;  %vm187_vm3 = vweird.f32 %v2336_v46 }
 0x11f   :  { %v206_v21 = vmul.f32 %v180_v19, %v1978_v41  ;;  %v1566_v5 = vor.u32 %v1792_v63, %v1563_v2  ;;  %v1554_v11 = vor.u32 %v1793_v10, %v1553_v7  ;;  %v1786_v19 = vld [vmem:[%s2792_s3 + $0x54] sm:$0xf0]  ;;  %v1515_v33 = vld [vmem:[%s2792_s3 + $0x38] sm:$0xf0]  ;;  %v1526_v54 = vor.u32 %v1783_v47, %v1523_v48  ;;  %v1781_v61 = vld [vmem:[%s2792_s3 + $0x2c] sm:$0xf0] }
 0x120   :  { %v1530_v29 = vor.u32 %v1786_v19, %v1529_v16  ;;  %v1518_v55 = vor.u32 %v1780_v53, %v1515_v33  ;;  %v1779_v62 = vld [vmem:[%s2792_s3 + $0x24] sm:$0xf]  ;;  %v1777_v10 = vld [vmem:[%s2792_s3 + $0xc] sm:$0xf0] }
 0x121   :  { %v246_v27 = vmul.f32 %v2207_v9, %v206_v21  ;;  %v218_v37 = vmul.f32 %v2202_v8, %v206_v21  ;;  %809 = vmatpush.bf16.msrb.mxu0 %v1570_v60  ;;  %v1537_v21 = vld [vmem:[%s2792_s3 + $0x60] sm:$0xf]  ;;  %897 = vmatpush.bf16.msrb.mxu3 %v1566_v5  ;;  %v1776_v5 = vld [vmem:[%s2792_s3 + $0xc] sm:$0xf]  ;;  %v1775_v32 = vld [vmem:[%s2792_s3 + $0x4] sm:$0xf] }
 0x122   :  { %867 = vmatpush.bf16.msrb.mxu2 %v1578_v23  ;;  %838 = vmatpush.bf16.msrb.mxu1 %v1574_v1  ;;  %v1550_v23 = vor.u32 %v1788_v18, %v1547_v14  ;;  %v1505_v60 = vld [vmem:[%s2792_s3 + $0x20] sm:$0xf]  ;;  %v1491_v18 = vld [vmem:[%s2792_s3 + $0x10] sm:$0xf0] }
 0x123   :  { %v258_v34 = vadd.f32 %v2229_v22, %v246_v27  ;;  %v230_v39 = vadd.f32 %v2223_v20, %v218_v37  ;;  %v2351_v52 = vpop.eup %1858  ;;  %v1539_v27 = vld [vmem:[%s2792_s3 + $0x70] sm:$0xf0]  ;;  %v1506_v63 = vor.u32 %v1781_v61, %v1505_v60  ;;  %v1494_v14 = vor.u32 %v1775_v32, %v1491_v18 }
 0x124   :  { %v182_v0 = vmul.f32 %v2351_v52, %v2336_v46  ;;  %v1542_v38 = vor.u32 %v1787_v26, %v1539_v27  ;;  %vm188_vm4 = vweird.f32 %v2351_v52  ;;  %v1489_v46 = vld [vmem:[%s2792_s3] sm:$0xf] }
 0x125   :  { %v2329_v41 = vpack.c.bf16 %v258_v34, %v257_v31  ;;  %v235_v43 = vpack.c.bf16 %v230_v39, %v229_v42  ;;  %810 = vmatpush.bf16.msrb.mxu0 %v1554_v11  ;;  %v1538_v31 = vor.u32 %v1789_v24, %v1537_v21  ;;  %v1784_v34 = vld [vmem:[%s2792_s3 + $0x4c] sm:$0xf]  ;;  %v1513_v39 = vld [vmem:[%s2792_s3 + $0x28] sm:$0xf]  ;;  %v1782_v42 = vld [vmem:[%s2792_s3 + $0x34] sm:$0xf0]  ;;  %898 = vmatpush.bf16.msrb.mxu3 %v1550_v23 }
 0x126   :  { %868 = vmatpush.bf16.msrb.mxu2 %v1562_v59  ;;  %v183_v28 = vmul.f32 %v2351_v52, %v182_v0  ;;  %839 = vmatpush.bf16.msrb.mxu1 %v1558_v15  ;;  %v1514_v30 = vor.u32 %v1782_v42, %v1513_v39  ;;  %v1498_v59 = vor.u32 %v1778_v58, %v1497_v57  ;;  %v1507_v0 = vld [vmem:[%s2792_s3 + $0x30] sm:$0xf0]  ;;  %vm189_vm5 = vmor %vm187_vm3, %vm188_vm4 }
 0x127   :  { %480 = vmatmul.bf16.gmra.mxu0 %v234_v35  ;;  %509 = vmatmul.bf16.gmra.mxu1 %v234_v35  ;;  %v1510_v1 = vor.u32 %v1779_v62, %v1507_v0  ;;  %v1490_v12 = vor.u32 %v1777_v10, %v1489_v46  ;;  %v1837_v10 = vld [vmem:[%s2795_s4 + $0xf0] sm:$0xff] }
 0x128   :  { %538 = vmatmul.bf16.gmra.mxu2 %v234_v35  ;;  %567 = vmatmul.bf16.gmra.mxu3 %v234_v35  ;;  %v1531_v35 = vld [vmem:[%s2792_s3 + $0x58] sm:$0xf0]  ;;  %v184_v25 = vmul.f32 0.5, %v183_v28 }
 0x129   :  { %v1534_v50 = vor.u32 %v1784_v34, %v1531_v35  ;;  %811 = vmatpush.bf16.msrb.mxu0 %v1538_v31 }
 0x12a   :  { %869 = vmatpush.bf16.msrb.mxu2 %v1546_v6  ;;  %840 = vmatpush.bf16.msrb.mxu1 %v1542_v38  ;;  %v185_v56 = vsub.f32 1.5, %v184_v25  ;;  %v1499_v6 = vld [vmem:[%s2792_s3 + $0x18] sm:$0xf0] }
 0x12b   :  { %899 = vmatpush.bf16.msrb.mxu3 %v1534_v50  ;;  %v1502_v7 = vor.u32 %v1776_v5, %v1499_v6  ;;  %v1814_v5 = vld [vmem:[%s2795_s4 + $0x38] sm:$0xff] }
 0x12c   :  { %v186_v3 = vmul.f32 %v2351_v52, %v185_v56  ;;  %v1822_v6 = vld [vmem:[%s2795_s4 + $0x78] sm:$0xff] }
 0x12e   :  { %870 = vmatpush.bf16.msrb.mxu2 %v1530_v29  ;;  %841 = vmatpush.bf16.msrb.mxu1 %v1526_v54  ;;  %v190_v15 = vsel %vm189_vm5, %v2351_v52, %v186_v3  ;;  %v1830_v3 = vld [vmem:[%s2795_s4 + $0xb8] sm:$0xff] }
 0x12f   :  { %900 = vmatpush.bf16.msrb.mxu3 %v1518_v55  ;;  %v207_v21 = vmul.f32 %v190_v15, %v1969_v36  ;;  %v1821_v15 = vld [vmem:[%s2795_s4 + $0x70] sm:$0xff] }
 0x131   :  { %v219_v26 = vmul.f32 %v2202_v8, %v207_v21  ;;  %v247_v27 = vmul.f32 %v2207_v9, %v207_v21  ;;  %v1828_v21 = vld [vmem:[%s2795_s4 + $0xa8] sm:$0xff] }
 0x132   :  { %871 = vmatpush.bf16.msrb.mxu2 %v1514_v30  ;;  %842 = vmatpush.bf16.msrb.mxu1 %v1510_v1 }
 0x133   :  { %901 = vmatpush.bf16.msrb.mxu3 %v1502_v7  ;;  %v231_v31 = vadd.f32 %v2223_v20, %v219_v26  ;;  %v259_v36 = vadd.f32 %v2229_v22, %v247_v27 }
 0x136   :  { %872 = vmatpush.bf16.msrb.mxu2 %v1498_v59  ;;  %843 = vmatpush.bf16.msrb.mxu1 %v1494_v14  ;;  %v1813_v14 = vld [vmem:[%s2795_s4 + $0x30] sm:$0xff] }
 0x137   :  { %485 = vmatmul.bf16.gmra.mxu0 %v235_v43  ;;  %514 = vmatmul.bf16.gmra.mxu1 %v235_v43 }
 0x138   :  { %543 = vmatmul.bf16.gmra.mxu2 %v235_v43  ;;  %572 = vmatmul.bf16.gmra.mxu3 %v235_v43  ;;  %v1521_v43 = vld [vmem:[%s2792_s3 + $0x40] sm:$0xf] }
 0x13a   :  { %1285 = vmatpush.bf16.msra.mxu2 %v1830_v3  ;;  %1256 = vmatpush.bf16.msra.mxu1 %v1822_v6 }
 0x13e   :  { %1257 = vmatpush.bf16.msra.mxu1 %v1821_v15 }
 0x172   :  { %v104_v37 = vpop.xlane.xlu0 %103 }
 0x173   :  { %v112_v44 = vmul.f32 %v104_v37, %v1939_v13  ;;  %v1522_v13 = vor.u32 %v1785_v45, %v1521_v43 }
 0x175   :  { %v120_v51 = vadd.f32 1e-06, %v112_v44  ;;  %812 = vmatpush.bf16.msrb.mxu0 %v1522_v13 }
 0x177   :  { %1860 = vrsqrt.f32 %v120_v51  ;;  %vm197_vm7 = vweird.f32 %v120_v51 }
 0x179   :  { %813 = vmatpush.bf16.msrb.mxu0 %v1506_v63 }
 0x17d   :  { %v1861_v2 = vpop.eup %1860  ;;  %814 = vmatpush.bf16.msrb.mxu0 %v1490_v12 }
 0x17e   :  { %v192_v4 = vmul.f32 %v1861_v2, %v120_v51  ;;  %vm198_vm6 = vweird.f32 %v1861_v2 }
 0x17f   :  { %vm199_vm8 = vmor %vm197_vm7, %vm198_vm6 }
 0x180   :  { %v193_v11 = vmul.f32 %v1861_v2, %v192_v4  ;;  %v1838_v4 = vld [vmem:[%s2795_s4 + $0xf8] sm:$0xff] }
 0x181   :  { %1314 = vmatpush.bf16.msra.mxu3 %v1838_v4  ;;  %1227 = vmatpush.bf16.msra.mxu0 %v1814_v5 }
 0x182   :  { %v194_v16 = vmul.f32 0.5, %v193_v11 }
 0x184   :  { %v195_v19 = vsub.f32 1.5, %v194_v16 }
 0x185   :  { %1315 = vmatpush.bf16.msra.mxu3 %v1837_v10  ;;  %1228 = vmatpush.bf16.msra.mxu0 %v1813_v14 }
 0x186   :  { %v196_v28 = vmul.f32 %v1861_v2, %v195_v19 }
 0x188   :  { %v200_v23 = vsel %vm199_vm8, %v1861_v2, %v196_v28  ;;  %v1836_v28 = vld [vmem:[%s2795_s4 + $0xe8] sm:$0xff] }
 0x189   :  { %v208_v24 = vmul.f32 %v200_v23, %v2179_v40  ;;  %v297_v40 = vld [vmem:[%s2793_s2] sm:$0xf]  ;;  %v1812_v23 = vld [vmem:[%s2795_s4 + $0x28] sm:$0xff]  ;;  %1316 = vmatpush.bf16.msra.mxu3 %v1836_v28 }
 0x18a   :  { %v2526_v43 = vperm.slane %v297_v40, 2  ;;  %v2528_v44 = vperm.slane %v297_v40, 3  ;;  %1229 = vmatpush.bf16.msra.mxu0 %v1812_v23 }
 0x18b   :  { %v220_v29 = vmul.f32 %v2202_v8, %v208_v24  ;;  %v248_v52 = vmul.f32 %v2207_v9, %v208_v24  ;;  %v2514_v8 = vperm.slane %v297_v40, 0  ;;  %v2516_v9 = vperm.slane %v297_v40, 1  ;;  %v1820_v24 = vld [vmem:[%s2795_s4 + $0x68] sm:$0xff] }
 0x18c   :  { %1258 = vmatpush.bf16.msra.mxu1 %v1820_v24 }
 0x18d   :  { %v232_v34 = vadd.f32 %v2223_v20, %v220_v29  ;;  %v260_v35 = vadd.f32 %v2229_v22, %v248_v52  ;;  %v1827_v29 = vld [vmem:[%s2795_s4 + $0xa0] sm:$0xff] }
 0x18e   :  { %v1835_v52 = vld [vmem:[%s2795_s4 + $0xe0] sm:$0xff] }
 0x18f   :  { %v236_v37 = vpack.c.bf16 %v232_v34, %v231_v31  ;;  %v2512_v38 = vpack.c.bf16 %v260_v35, %v259_v36  ;;  %1317 = vmatpush.bf16.msra.mxu3 %v1835_v52 }
 0x191   :  { %490 = vmatmul.bf16.gmra.mxu0 %v236_v37  ;;  %519 = vmatmul.bf16.gmra.mxu1 %v236_v37 }
 0x192   :  { %548 = vmatmul.bf16.gmra.mxu2 %v236_v37  ;;  %577 = vmatmul.bf16.gmra.mxu3 %v236_v37 }
 0x194   :  { %v476_v20 = vpop.f32.mrf.mxu0  ;;  %v505_v39 = vpop.f32.mrf.mxu1 }
 0x195   :  { %v477_v42 = vadd.f32 %v476_v20, %v2514_v8  ;;  %v506_v22 = vadd.f32 %v505_v39, %v2516_v9  ;;  %v1811_v20 = vld [vmem:[%s2795_s4 + $0x20] sm:$0xff] }
 0x196   :  { %v1819_v39 = vld [vmem:[%s2795_s4 + $0x60] sm:$0xff]  ;;  %1230 = vmatpush.bf16.msra.mxu0 %v1811_v20 }
 0x197   :  { %583 = vst [vmem:[%s2794_s9] sm:$0xff] %v477_v42  ;;  %1259 = vmatpush.bf16.msra.mxu1 %v1819_v39 }
 0x198   :  { %584 = vst [vmem:[%s2794_s9 + $0x8] sm:$0xff] %v506_v22 }
 0x19b   :  { %v534_v45 = vpop.f32.mrf.mxu2  ;;  %v563_v47 = vpop.f32.mrf.mxu3 }
 0x19c   :  { %v535_v48 = vadd.f32 %v534_v45, %v2526_v43  ;;  %v564_v25 = vadd.f32 %v563_v47, %v2528_v44  ;;  %v478_v50 = vpop.f32.mrf.mxu0  ;;  %v507_v51 = vpop.f32.mrf.mxu1 }
 0x19d   :  { %v479_v30 = vadd.f32 %v478_v50, %v2514_v8  ;;  %v508_v13 = vadd.f32 %v507_v51, %v2516_v9  ;;  %v1818_v50 = vld [vmem:[%s2795_s4 + $0x58] sm:$0xff]  ;;  %v1833_v51 = vld [vmem:[%s2795_s4 + $0xd0] sm:$0xff] }
 0x19e   :  { %585 = vst [vmem:[%s2794_s9 + $0x10] sm:$0xff] %v535_v48  ;;  %v1834_v48 = vld [vmem:[%s2795_s4 + $0xd8] sm:$0xff]  ;;  %1260 = vmatpush.bf16.msra.mxu1 %v1818_v50 }
 0x19f   :  { %586 = vst [vmem:[%s2794_s9 + $0x18] sm:$0xff] %v564_v25  ;;  %1318 = vmatpush.bf16.msra.mxu3 %v1834_v48  ;;  %v1810_v25 = vld [vmem:[%s2795_s4 + $0x18] sm:$0xff] }
 0x1a0   :  { %587 = vst [vmem:[%s2794_s9 + $0x20] sm:$0xff] %v479_v30  ;;  %1231 = vmatpush.bf16.msra.mxu0 %v1810_v25  ;;  %v1809_v30 = vld [vmem:[%s2795_s4 + $0x10] sm:$0xff] }
 0x1a1   :  { %815 = vmatmul.bf16.vlgmr.msrb.gmra.mxu0 %v2255_v49  ;;  %844 = vmatmul.bf16.vlgmr.msrb.gmra.mxu1 %v2255_v49  ;;  %588 = vst [vmem:[%s2794_s9 + $0x28] sm:$0xff] %v508_v13  ;;  %v1817_v13 = vld [vmem:[%s2795_s4 + $0x50] sm:$0xff] }
 0x1a2   :  { %873 = vmatmul.bf16.vlgmr.msrb.gmra.mxu2 %v2255_v49  ;;  %902 = vmatmul.bf16.vlgmr.msrb.gmra.mxu3 %v2255_v49 }
 0x1a3   :  { %v536_v53 = vpop.f32.mrf.mxu2  ;;  %v565_v33 = vpop.f32.mrf.mxu3  ;;  %1319 = vmatpush.bf16.msra.mxu3 %v1833_v51  ;;  %1261 = vmatpush.bf16.msra.mxu1 %v1817_v13 }
 0x1a4   :  { %v537_v54 = vadd.f32 %v536_v53, %v2526_v43  ;;  %v566_v55 = vadd.f32 %v565_v33, %v2528_v44  ;;  %v481_v56 = vpop.f32.mrf.mxu0  ;;  %v510_v57 = vpop.f32.mrf.mxu1  ;;  %v1824_v53 = vld [vmem:[%s2795_s4 + $0x88] sm:$0xff]  ;;  %1232 = vmatpush.bf16.msra.mxu0 %v1809_v30 }
 0x1a5   :  { %v482_v58 = vadd.f32 %v481_v56, %v2514_v8  ;;  %v511_v59 = vadd.f32 %v510_v57, %v2516_v9  ;;  %v1832_v33 = vld [vmem:[%s2795_s4 + $0xc8] sm:$0xff]  ;;  %v1807_v56 = vld [vmem:[%s2795_s4] sm:$0xff] }
 0x1a6   :  { %589 = vst [vmem:[%s2794_s9 + $0x30] sm:$0xff] %v537_v54  ;;  %v1808_v54 = vld [vmem:[%s2795_s4 + $0x8] sm:$0xff]  ;;  %v1815_v57 = vld [vmem:[%s2795_s4 + $0x40] sm:$0xff] }
 0x1a7   :  { %590 = vst [vmem:[%s2794_s9 + $0x38] sm:$0xff] %v566_v55  ;;  %1320 = vmatpush.bf16.msra.mxu3 %v1832_v33  ;;  %v1816_v55 = vld [vmem:[%s2795_s4 + $0x48] sm:$0xff] }
 0x1a8   :  { %591 = vst [vmem:[%s2794_s9 + $0x40] sm:$0xff] %v482_v58  ;;  %1233 = vmatpush.bf16.msra.mxu0 %v1808_v54  ;;  %1262 = vmatpush.bf16.msra.mxu1 %v1816_v55  ;;  %v1823_v58 = vld [vmem:[%s2795_s4 + $0x80] sm:$0xff] }
 0x1a9   :  { %592 = vst [vmem:[%s2794_s9 + $0x48] sm:$0xff] %v511_v59  ;;  %v1831_v59 = vld [vmem:[%s2795_s4 + $0xc0] sm:$0xff] }
 0x1ab   :  { %v539_v49 = vpop.f32.mrf.mxu2  ;;  %v568_v60 = vpop.f32.mrf.mxu3  ;;  %1321 = vmatpush.bf16.msra.mxu3 %v1831_v59 }
 0x1ac   :  { %v540_v61 = vadd.f32 %v539_v49, %v2526_v43  ;;  %v569_v62 = vadd.f32 %v568_v60, %v2528_v44  ;;  %v483_v63 = vpop.f32.mrf.mxu0  ;;  %v512_v0 = vpop.f32.mrf.mxu1  ;;  %1234 = vmatpush.bf16.msra.mxu0 %v1807_v56  ;;  %1263 = vmatpush.bf16.msra.mxu1 %v1815_v57 }
 0x1ad   :  { %v484_v1 = vadd.f32 %v483_v63, %v2514_v8  ;;  %v513_v2 = vadd.f32 %v512_v0, %v2516_v9 }
 0x1ae   :  { %593 = vst [vmem:[%s2794_s9 + $0x50] sm:$0xff] %v540_v61 }
 0x1af   :  { %594 = vst [vmem:[%s2794_s9 + $0x58] sm:$0xff] %v569_v62 }
 0x1b0   :  { %595 = vst [vmem:[%s2794_s9 + $0x60] sm:$0xff] %v484_v1 }
 0x1b1   :  { %820 = vmatmul.bf16.gmra.mxu0 %v2317_v17  ;;  %849 = vmatmul.bf16.gmra.mxu1 %v2317_v17  ;;  %596 = vst [vmem:[%s2794_s9 + $0x68] sm:$0xff] %v513_v2 }
 0x1b2   :  { %878 = vmatmul.bf16.gmra.mxu2 %v2317_v17  ;;  %907 = vmatmul.bf16.gmra.mxu3 %v2317_v17  ;;  %v1829_v17 = vld [vmem:[%s2795_s4 + $0xb0] sm:$0xff] }
 0x1b3   :  { %v541_v46 = vpop.f32.mrf.mxu2  ;;  %v570_v7 = vpop.f32.mrf.mxu3  ;;  %1286 = vmatpush.bf16.msra.mxu2 %v1829_v17 }
 0x1b4   :  { %v542_v32 = vadd.f32 %v541_v46, %v2526_v43  ;;  %v571_v11 = vadd.f32 %v570_v7, %v2528_v44  ;;  %v486_v12 = vpop.f32.mrf.mxu0  ;;  %v515_v18 = vpop.f32.mrf.mxu1 }
 0x1b5   :  { %v487_v16 = vadd.f32 %v486_v12, %v2514_v8  ;;  %v516_v19 = vadd.f32 %v515_v18, %v2516_v9 }
 0x1b6   :  { %597 = vst [vmem:[%s2794_s9 + $0x70] sm:$0xff] %v542_v32 }
 0x1b7   :  { %598 = vst [vmem:[%s2794_s9 + $0x78] sm:$0xff] %v571_v11  ;;  %1287 = vmatpush.bf16.msra.mxu2 %v1828_v21 }
 0x1b8   :  { %599 = vst [vmem:[%s2794_s9 + $0x80] sm:$0xff] %v487_v16 }
 0x1b9   :  { %600 = vst [vmem:[%s2794_s9 + $0x88] sm:$0xff] %v516_v19 }
 0x1bb   :  { %v544_v26 = vpop.f32.mrf.mxu2  ;;  %v573_v27 = vpop.f32.mrf.mxu3  ;;  %1288 = vmatpush.bf16.msra.mxu2 %v1827_v29 }
 0x1bc   :  { %v545_v31 = vadd.f32 %v544_v26, %v2526_v43  ;;  %v574_v34 = vadd.f32 %v573_v27, %v2528_v44  ;;  %v488_v36 = vpop.f32.mrf.mxu0  ;;  %v517_v35 = vpop.f32.mrf.mxu1 }
 0x1bd   :  { %v489_v37 = vadd.f32 %v488_v36, %v2514_v8  ;;  %v518_v40 = vadd.f32 %v517_v35, %v2516_v9 }
 0x1be   :  { %601 = vst [vmem:[%s2794_s9 + $0x90] sm:$0xff] %v545_v31 }
 0x1bf   :  { %602 = vst [vmem:[%s2794_s9 + $0x98] sm:$0xff] %v574_v34 }
 0x1c0   :  { %603 = vst [vmem:[%s2794_s9 + $0xa0] sm:$0xff] %v489_v37 }
 0x1c1   :  { %825 = vmatmul.bf16.gmra.mxu0 %v2329_v41  ;;  %854 = vmatmul.bf16.gmra.mxu1 %v2329_v41  ;;  %604 = vst [vmem:[%s2794_s9 + $0xa8] sm:$0xff] %v518_v40 }
 0x1c2   :  { %883 = vmatmul.bf16.gmra.mxu2 %v2329_v41  ;;  %912 = vmatmul.bf16.gmra.mxu3 %v2329_v41  ;;  %v1826_v41 = vld [vmem:[%s2795_s4 + $0x98] sm:$0xff] }
 0x1c3   :  { %v546_v42 = vpop.f32.mrf.mxu2  ;;  %v575_v22 = vpop.f32.mrf.mxu3  ;;  %1289 = vmatpush.bf16.msra.mxu2 %v1826_v41 }
 0x1c4   :  { %v547_v45 = vadd.f32 %v546_v42, %v2526_v43  ;;  %v576_v47 = vadd.f32 %v575_v22, %v2528_v44 }
 0x1c6   :  { %605 = vst [vmem:[%s2794_s9 + $0xb0] sm:$0xff] %v547_v45 }
 0x1c7   :  { %606 = vst [vmem:[%s2794_s9 + $0xb8] sm:$0xff] %v576_v47 }
 0x1d1   :  { %830 = vmatmul.bf16.gmra.mxu0 %v2512_v38  ;;  %859 = vmatmul.bf16.gmra.mxu1 %v2512_v38 }
 0x1d2   :  { %888 = vmatmul.bf16.gmra.mxu2 %v2512_v38  ;;  %917 = vmatmul.bf16.gmra.mxu3 %v2512_v38  ;;  %v1825_v38 = vld [vmem:[%s2795_s4 + $0x90] sm:$0xff] }
 0x1d3   :  { %1290 = vmatpush.bf16.msra.mxu2 %v1825_v38 }
 0x1d7   :  { %1291 = vmatpush.bf16.msra.mxu2 %v1824_v53 }
 0x1db   :  { %1292 = vmatpush.bf16.msra.mxu2 %v1823_v58 }
 0x20e   :  { %v491_v49 = vpop.f32.mrf.mxu0  ;;  %v520_v60 = vpop.f32.mrf.mxu1 }
 0x20f   :  { %v492_v61 = vadd.f32 %v491_v49, %v2514_v8  ;;  %v521_v62 = vadd.f32 %v520_v60, %v2516_v9 }
 0x211   :  { %607 = vst [vmem:[%s2794_s9 + $0xc0] sm:$0xff] %v492_v61 }
 0x212   :  { %608 = vst [vmem:[%s2794_s9 + $0xc8] sm:$0xff] %v521_v62 }
 0x215   :  { %v549_v63 = vpop.f32.mrf.mxu2  ;;  %v578_v0 = vpop.f32.mrf.mxu3 }
 0x216   :  { %v550_v1 = vadd.f32 %v549_v63, %v2526_v43  ;;  %v579_v2 = vadd.f32 %v578_v0, %v2528_v44  ;;  %v493_v3 = vpop.f32.mrf.mxu0  ;;  %v522_v4 = vpop.f32.mrf.mxu1 }
 0x217   :  { %v494_v5 = vadd.f32 %v493_v3, %v2514_v8  ;;  %v523_v6 = vadd.f32 %v522_v4, %v2516_v9 }
 0x218   :  { %609 = vst [vmem:[%s2794_s9 + $0xd0] sm:$0xff] %v550_v1 }
 0x219   :  { %610 = vst [vmem:[%s2794_s9 + $0xd8] sm:$0xff] %v579_v2 }
 0x21a   :  { %611 = vst [vmem:[%s2794_s9 + $0xe0] sm:$0xff] %v494_v5 }
 0x21b   :  { %612 = vst [vmem:[%s2794_s9 + $0xe8] sm:$0xff] %v523_v6 }
 0x21d   :  { %v551_v46 = vpop.f32.mrf.mxu2  ;;  %v580_v8 = vpop.f32.mrf.mxu3 }
 0x21e   :  { %v552_v9 = vadd.f32 %v551_v46, %v2526_v43  ;;  %v581_v7 = vadd.f32 %v580_v8, %v2528_v44  ;;  %v816_v17 = vpop.f32.mrf.mxu0  ;;  %v845_v10 = vpop.f32.mrf.mxu1 }
 0x21f   :  { %v923_v14 = vmax.f32 %v816_v17, 0.0  ;;  %v924_v15 = vmax.f32 %v845_v10, 0.0 }
 0x220   :  { %613 = vst [vmem:[%s2794_s9 + $0xf0] sm:$0xff] %v552_v9 }
 0x221   :  { %614 = vst [vmem:[%s2794_s9 + $0xf8] sm:$0xff] %v581_v7 }
 0x225   :  { %v874_v32 = vpop.f32.mrf.mxu2  ;;  %v903_v11 = vpop.f32.mrf.mxu3 }
 0x226   :  { %v818_v12 = vpop.f32.mrf.mxu0  ;;  %v847_v18 = vpop.f32.mrf.mxu1  ;;  %v925_v23 = vmax.f32 %v874_v32, 0.0  ;;  %v926_v24 = vmax.f32 %v903_v11, 0.0 }
 0x227   :  { %v927_v16 = vmax.f32 %v818_v12, 0.0  ;;  %v928_v43 = vmax.f32 %v847_v18, 0.0 }
 0x229   :  { %v955_v19 = vpack.c.bf16 %v927_v16, %v923_v14  ;;  %v956_v44 = vpack.c.bf16 %v928_v43, %v924_v15 }
 0x22b   :  { %1235 = vmatmul.bf16.vlgmr.msra.gmra.mxu0 %v955_v19  ;;  %1264 = vmatmul.bf16.vlgmr.msra.gmra.mxu1 %v956_v44 }
 0x22d   :  { %v876_v21 = vpop.f32.mrf.mxu2  ;;  %v905_v28 = vpop.f32.mrf.mxu3 }
 0x22e   :  { %v929_v26 = vmax.f32 %v876_v21, 0.0  ;;  %v930_v27 = vmax.f32 %v905_v28, 0.0  ;;  %v821_v29 = vpop.f32.mrf.mxu0  ;;  %v850_v52 = vpop.f32.mrf.mxu1 }
 0x22f   :  { %v931_v20 = vmax.f32 %v821_v29, 0.0  ;;  %v932_v39 = vmax.f32 %v850_v52, 0.0 }
 0x230   :  { %v957_v31 = vpack.c.bf16 %v929_v26, %v925_v23  ;;  %v958_v34 = vpack.c.bf16 %v930_v27, %v926_v24 }
 0x232   :  { %1293 = vmatmul.bf16.vlgmr.msra.gmra.mxu2 %v957_v31  ;;  %1322 = vmatmul.bf16.vlgmr.msra.gmra.mxu3 %v958_v34 }
 0x235   :  { %v879_v36 = vpop.f32.mrf.mxu2  ;;  %v908_v35 = vpop.f32.mrf.mxu3 }
 0x236   :  { %v823_v37 = vpop.f32.mrf.mxu0  ;;  %v852_v40 = vpop.f32.mrf.mxu1  ;;  %v933_v25 = vmax.f32 %v879_v36, 0.0  ;;  %v934_v50 = vmax.f32 %v908_v35, 0.0 }
 0x237   :  { %v935_v42 = vmax.f32 %v823_v37, 0.0  ;;  %v936_v22 = vmax.f32 %v852_v40, 0.0 }
 0x239   :  { %v959_v45 = vpack.c.bf16 %v935_v42, %v931_v20  ;;  %v960_v47 = vpack.c.bf16 %v936_v22, %v932_v39 }
 0x23b   :  { %1240 = vmatmul.bf16.gmra.mxu0 %v959_v45  ;;  %1269 = vmatmul.bf16.gmra.mxu1 %v960_v47 }
 0x23d   :  { %v881_v41 = vpop.f32.mrf.mxu2  ;;  %v910_v48 = vpop.f32.mrf.mxu3 }
 0x23e   :  { %v937_v38 = vmax.f32 %v881_v41, 0.0  ;;  %v938_v51 = vmax.f32 %v910_v48, 0.0  ;;  %v826_v30 = vpop.f32.mrf.mxu0  ;;  %v855_v13 = vpop.f32.mrf.mxu1 }
 0x23f   :  { %v939_v58 = vmax.f32 %v826_v30, 0.0  ;;  %v940_v59 = vmax.f32 %v855_v13, 0.0 }
 0x240   :  { %v961_v53 = vpack.c.bf16 %v937_v38, %v933_v25  ;;  %v962_v33 = vpack.c.bf16 %v938_v51, %v934_v50 }
 0x242   :  { %1298 = vmatmul.bf16.gmra.mxu2 %v961_v53  ;;  %1327 = vmatmul.bf16.gmra.mxu3 %v962_v33 }
 0x245   :  { %v884_v54 = vpop.f32.mrf.mxu2  ;;  %v913_v55 = vpop.f32.mrf.mxu3 }
 0x246   :  { %v828_v56 = vpop.f32.mrf.mxu0  ;;  %v857_v57 = vpop.f32.mrf.mxu1  ;;  %v941_v1 = vmax.f32 %v884_v54, 0.0  ;;  %v942_v2 = vmax.f32 %v913_v55, 0.0 }
 0x247   :  { %v943_v49 = vmax.f32 %v828_v56, 0.0  ;;  %v944_v60 = vmax.f32 %v857_v57, 0.0 }
 0x249   :  { %v963_v61 = vpack.c.bf16 %v943_v49, %v939_v58  ;;  %v964_v62 = vpack.c.bf16 %v944_v60, %v940_v59 }
 0x24b   :  { %1245 = vmatmul.bf16.gmra.mxu0 %v963_v61  ;;  %1274 = vmatmul.bf16.gmra.mxu1 %v964_v62 }
 0x24d   :  { %v886_v63 = vpop.f32.mrf.mxu2  ;;  %v915_v0 = vpop.f32.mrf.mxu3 }
 0x24e   :  { %v945_v3 = vmax.f32 %v886_v63, 0.0  ;;  %v946_v4 = vmax.f32 %v915_v0, 0.0  ;;  %v831_v5 = vpop.f32.mrf.mxu0  ;;  %v860_v6 = vpop.f32.mrf.mxu1 }
 0x24f   :  { %v947_v32 = vmax.f32 %v831_v5, 0.0  ;;  %v948_v11 = vmax.f32 %v860_v6, 0.0 }
 0x250   :  { %v965_v46 = vpack.c.bf16 %v945_v3, %v941_v1  ;;  %v966_v8 = vpack.c.bf16 %v946_v4, %v942_v2 }
 0x252   :  { %1303 = vmatmul.bf16.gmra.mxu2 %v965_v46  ;;  %1332 = vmatmul.bf16.gmra.mxu3 %v966_v8 }
 0x255   :  { %v889_v9 = vpop.f32.mrf.mxu2  ;;  %v918_v7 = vpop.f32.mrf.mxu3 }
 0x256   :  { %v833_v17 = vpop.f32.mrf.mxu0  ;;  %v862_v10 = vpop.f32.mrf.mxu1  ;;  %v949_v19 = vmax.f32 %v889_v9, 0.0  ;;  %v950_v44 = vmax.f32 %v918_v7, 0.0 }
 0x257   :  { %v951_v12 = vmax.f32 %v833_v17, 0.0  ;;  %v952_v18 = vmax.f32 %v862_v10, 0.0 }
 0x259   :  { %v967_v14 = vpack.c.bf16 %v951_v12, %v947_v32  ;;  %v968_v15 = vpack.c.bf16 %v952_v18, %v948_v11 }
 0x25b   :  { %1250 = vmatmul.bf16.gmra.mxu0 %v967_v14  ;;  %1279 = vmatmul.bf16.gmra.mxu1 %v968_v15 }
 0x25d   :  { %v891_v16 = vpop.f32.mrf.mxu2  ;;  %v920_v43 = vpop.f32.mrf.mxu3 }
 0x25e   :  { %v953_v21 = vmax.f32 %v891_v16, 0.0  ;;  %v954_v28 = vmax.f32 %v920_v43, 0.0 }
 0x260   :  { %v969_v23 = vpack.c.bf16 %v953_v21, %v949_v19  ;;  %v970_v24 = vpack.c.bf16 %v954_v28, %v950_v44 }
 0x262   :  { %1308 = vmatmul.bf16.gmra.mxu2 %v969_v23  ;;  %1337 = vmatmul.bf16.gmra.mxu3 %v970_v24 }
 0x2a8   :  { %v1236_v26 = vpop.f32.mrf.mxu0  ;;  %v1265_v27 = vpop.f32.mrf.mxu1 }
 0x2a9   :  { %v1266_v31 = vadd.f32 %v1265_v27, %v1236_v26 }
 0x2b0   :  { %v1238_v29 = vpop.f32.mrf.mxu0  ;;  %v1267_v52 = vpop.f32.mrf.mxu1 }
 0x2b1   :  { %v1268_v39 = vadd.f32 %v1267_v52, %v1238_v29 }
 0x2b5   :  { %v1294_v34 = vpop.f32.mrf.mxu2  ;;  %v1323_v36 = vpop.f32.mrf.mxu3 }
 0x2b6   :  { %v1295_v35 = vadd.f32 %v1294_v34, %v1266_v31 }
 0x2b8   :  { %v1324_v37 = vadd.f32 %v1323_v36, %v1295_v35  ;;  %v1241_v40 = vpop.f32.mrf.mxu0  ;;  %v1270_v20 = vpop.f32.mrf.mxu1 }
 0x2b9   :  { %v1271_v25 = vadd.f32 %v1270_v20, %v1241_v40 }
 0x2ba   :  { %1343 = vst [vmem:[%s2796_s10] sm:$0xff] %v1324_v37 }
 0x2bd   :  { %v1296_v42 = vpop.f32.mrf.mxu2  ;;  %v1325_v22 = vpop.f32.mrf.mxu3 }
 0x2be   :  { %v1297_v45 = vadd.f32 %v1296_v42, %v1268_v39 }
 0x2c0   :  { %v1326_v47 = vadd.f32 %v1325_v22, %v1297_v45  ;;  %v1243_v41 = vpop.f32.mrf.mxu0  ;;  %v1272_v48 = vpop.f32.mrf.mxu1 }
 0x2c1   :  { %v1273_v33 = vadd.f32 %v1272_v48, %v1243_v41 }
 0x2c2   :  { %1344 = vst [vmem:[%s2796_s10 + $0x8] sm:$0xff] %v1326_v47 }
 0x2c5   :  { %v1299_v50 = vpop.f32.mrf.mxu2  ;;  %v1328_v38 = vpop.f32.mrf.mxu3 }
 0x2c6   :  { %v1300_v51 = vadd.f32 %v1299_v50, %v1271_v25 }
 0x2c8   :  { %v1329_v30 = vadd.f32 %v1328_v38, %v1300_v51  ;;  %v1246_v13 = vpop.f32.mrf.mxu0  ;;  %v1275_v53 = vpop.f32.mrf.mxu1 }
 0x2c9   :  { %v1276_v58 = vadd.f32 %v1275_v53, %v1246_v13 }
 0x2ca   :  { %1345 = vst [vmem:[%s2796_s10 + $0x10] sm:$0xff] %v1329_v30 }
 0x2cd   :  { %v1301_v54 = vpop.f32.mrf.mxu2  ;;  %v1330_v55 = vpop.f32.mrf.mxu3 }
 0x2ce   :  { %v1302_v56 = vadd.f32 %v1301_v54, %v1273_v33 }
 0x2d0   :  { %v1331_v57 = vadd.f32 %v1330_v55, %v1302_v56  ;;  %v1248_v59 = vpop.f32.mrf.mxu0  ;;  %v1277_v49 = vpop.f32.mrf.mxu1 }
 0x2d1   :  { %v1278_v0 = vadd.f32 %v1277_v49, %v1248_v59 }
 0x2d2   :  { %1346 = vst [vmem:[%s2796_s10 + $0x18] sm:$0xff] %v1331_v57 }
 0x2d5   :  { %v1304_v60 = vpop.f32.mrf.mxu2  ;;  %v1333_v61 = vpop.f32.mrf.mxu3 }
 0x2d6   :  { %v1305_v62 = vadd.f32 %v1304_v60, %v1276_v58 }
 0x2d8   :  { %v1334_v63 = vadd.f32 %v1333_v61, %v1305_v62  ;;  %v1251_v4 = vpop.f32.mrf.mxu0  ;;  %v1280_v5 = vpop.f32.mrf.mxu1 }
 0x2d9   :  { %v1281_v46 = vadd.f32 %v1280_v5, %v1251_v4 }
 0x2da   :  { %1347 = vst [vmem:[%s2796_s10 + $0x20] sm:$0xff] %v1334_v63 }
 0x2dd   :  { %v1306_v1 = vpop.f32.mrf.mxu2  ;;  %v1335_v2 = vpop.f32.mrf.mxu3 }
 0x2de   :  { %v1307_v3 = vadd.f32 %v1306_v1, %v1278_v0 }
 0x2e0   :  { %v1336_v6 = vadd.f32 %v1335_v2, %v1307_v3  ;;  %v1253_v10 = vpop.f32.mrf.mxu0  ;;  %v1282_v32 = vpop.f32.mrf.mxu1 }
 0x2e1   :  { %v1283_v11 = vadd.f32 %v1282_v32, %v1253_v10 }
 0x2e2   :  { %1348 = vst [vmem:[%s2796_s10 + $0x28] sm:$0xff] %v1336_v6 }
 0x2e5   :  { %v1309_v8 = vpop.f32.mrf.mxu2  ;;  %v1338_v9 = vpop.f32.mrf.mxu3 }
 0x2e6   :  { %v1310_v7 = vadd.f32 %v1309_v8, %v1281_v46 }
 0x2e8   :  { %v1339_v17 = vadd.f32 %v1338_v9, %v1310_v7 }
 0x2ea   :  { %1349 = vst [vmem:[%s2796_s10 + $0x30] sm:$0xff] %v1339_v17 }
 0x2ed   :  { %v1311_v12 = vpop.f32.mrf.mxu2  ;;  %v1340_v14 = vpop.f32.mrf.mxu3 }
 0x2ee   :  { %v1312_v18 = vadd.f32 %v1311_v12, %v1283_v11 }
 0x2f0   :  { %v1341_v15 = vadd.f32 %v1340_v14, %v1312_v18 }
 0x2f2   :  { %1350 = vst [vmem:[%s2796_s10 + $0x38] sm:$0xff] %v1341_v15 }

</bundles_post_ra>
